<compile_context>
chip_gen: v7x
topology: tpu7x:2x2x1
jax: 0.10.0
libtpu: 0.0.40
codegen_flags: <defaults>
</compile_context>

<pallas_src>
import functools

import numpy as np
import jax
import jax.numpy as jnp
from jax.experimental import pallas as pl
from jax.experimental.pallas import tpu as pltpu


# ---------------------------------------------------------------------------
# Structure constants (pure 0/1 matrices, depend only on shapes / batch size)
# ---------------------------------------------------------------------------
def _structure_constants(B):
    K = 5
    H1, OC1 = 28, 6
    OH1 = H1 - K + 1            # 24
    PH1 = OH1 // 2              # 12
    H2, OC2 = PH1, 16
    OH2 = H2 - K + 1            # 8
    PH2 = OH2 // 2              # 4

    def shift_select(ki, n_out, n_in):
        s = np.zeros((B * n_out, B * n_in), np.float32)
        for b in range(B):
            s[b * n_out + np.arange(n_out),
              b * n_in + np.arange(n_out) + ki] = 1.0
        return s

    def pool_rows(di, n_out, n_in):
        s = np.zeros((B * n_out, B * n_in), np.float32)
        for b in range(B):
            s[b * n_out + np.arange(n_out),
              b * n_in + 2 * np.arange(n_out) + di] = 1.0
        return s

    def pool_cols(dj, n_out, n_in, C):
        s = np.zeros((n_in * C, n_out * C), np.float32)
        q = np.repeat(np.arange(n_out), C)
        c = np.tile(np.arange(C), n_out)
        s[(2 * q + dj) * C + c, q * C + c] = 1.0
        return s

    S1 = np.stack([shift_select(ki, OH1, H1) for ki in range(K)])   # (5, 48, 56)
    S2 = np.stack([shift_select(ki, OH2, H2) for ki in range(K)])   # (5, 16, 24)
    PR1 = np.stack([pool_rows(di, PH1, OH1) for di in range(2)])    # (2, 24, 48)
    PR2 = np.stack([pool_rows(di, PH2, OH2) for di in range(2)])    # (2,  8, 16)
    PC1 = np.stack([pool_cols(dj, PH1, OH1, OC1) for dj in range(2)])  # (2,144,72)
    PC2 = np.stack([pool_cols(dj, PH2, OH2, OC2) for dj in range(2)])  # (2,128,64)

    G = np.zeros((PH2, B, B * PH2), np.float32)                     # (4, B, B*4)
    for h in range(PH2):
        for b in range(B):
            G[h, b, b * PH2 + h] = 1.0

    return dict(S1=jnp.asarray(S1), S2=jnp.asarray(S2),
                PR1=jnp.asarray(PR1), PR2=jnp.asarray(PR2),
                PC1=jnp.asarray(PC1), PC2=jnp.asarray(PC2),
                G=jnp.asarray(G))


def _conv_band_matrix(w, OW):
    """w: (OC, C, K, K) -> (K, (OW+K-1)*C, OW*OC) banded matmul matrices.

    M[ki][(j+kj)*C + c, j*OC + oc] = w[oc, c, ki, kj]
    """
    OC, C, K, _ = w.shape
    Win = OW + K - 1
    ki, kj, j, c, oc = np.meshgrid(np.arange(K), np.arange(K), np.arange(OW),
                                   np.arange(C), np.arange(OC), indexing="ij")
    ki, kj, j, c, oc = (a.ravel() for a in (ki, kj, j, c, oc))
    rows = (j + kj) * C + c
    cols = j * OC + oc
    vals = w[oc, c, ki, kj]
    m = jnp.zeros((K, Win * C, OW * OC), jnp.float32)
    return m.at[ki, rows, cols].set(vals)


# ---------------------------------------------------------------------------
# The single fused kernel: whole forward pass, everything stays in VMEM.
# ---------------------------------------------------------------------------
def _lenet_kernel(x_ref, s1_ref, m1_ref, b1_ref, pr1_ref, pc1_ref,
                  s2_ref, m2_ref, b2_ref, pr2_ref, pc2_ref,
                  g_ref, w1_ref, bf1_ref, w2_ref, bf2_ref, w3_ref, bf3_ref,
                  o_ref, *, K, PH2):
    dot = functools.partial(jnp.dot, preferred_element_type=jnp.float32)
    x = x_ref[...]                                          # (B*28, 28*3)

    # conv1 + bias + ReLU: sum over the K row shifts of banded matmuls.
    acc = dot(dot(s1_ref[0], x), m1_ref[0])
    for ki in range(1, K):
        acc = acc + dot(dot(s1_ref[ki], x), m1_ref[ki])
    a1 = jnp.maximum(acc + b1_ref[...], 0.0)                # (B*24, 24*6)

    # 2x2 max-pool #1: max over row-selections, then over column-selections.
    rm = jnp.maximum(dot(pr1_ref[0], a1), dot(pr1_ref[1], a1))
    p1 = jnp.maximum(dot(rm, pc1_ref[0]), dot(rm, pc1_ref[1]))   # (B*12, 12*6)

    # conv2 + bias + ReLU.
    acc = dot(dot(s2_ref[0], p1), m2_ref[0])
    for ki in range(1, K):
        acc = acc + dot(dot(s2_ref[ki], p1), m2_ref[ki])
    a2 = jnp.maximum(acc + b2_ref[...], 0.0)                # (B*8, 8*16)

    # 2x2 max-pool #2.
    rm = jnp.maximum(dot(pr2_ref[0], a2), dot(pr2_ref[1], a2))
    p2 = jnp.maximum(dot(rm, pc2_ref[0]), dot(rm, pc2_ref[1]))   # (B*4, 4*16)

    # flatten (torch NCHW .view order folded into fc1 weight blocks) + fc1.
    acc = dot(dot(g_ref[0], p2), w1_ref[0])
    for h in range(1, PH2):
        acc = acc + dot(dot(g_ref[h], p2), w1_ref[h])
    f1 = jnp.maximum(acc + bf1_ref[...], 0.0)               # (B, 120)

    # fc2 + ReLU, fc3.
    f2 = jnp.maximum(dot(f1, w2_ref[...]) + bf2_ref[...], 0.0)   # (B, 84)
    o_ref[...] = dot(f2, w3_ref[...]) + bf3_ref[...]             # (B, 10)


# ---------------------------------------------------------------------------
# Wrapper: weight prep + one pallas_call.
# ---------------------------------------------------------------------------
def net_forward(x, params):
    B, Cin, H, W = x.shape
    assert (Cin, H, W) == (3, 28, 28), "fc1 expects 16*4*4 => 28x28 input"
    K = 5
    OW1, OC1 = 24, 6
    OW2, OC2 = 8, 16
    PH2, PW2 = 4, 4
    f32 = jnp.float32

    sc = _structure_constants(B)

    # Single input permute NCHW -> (batch*height, width*channel).
    xm = jnp.transpose(x.astype(f32), (0, 2, 3, 1)).reshape(B * H, W * Cin)

    M1 = _conv_band_matrix(params["conv1_w"].astype(f32), OW1)   # (5, 84, 144)
    M2 = _conv_band_matrix(params["conv2_w"].astype(f32), OW2)   # (5, 72, 128)
    b1r = jnp.tile(params["conv1_b"].astype(f32), OW1)[None, :]  # (1, 144)
    b2r = jnp.tile(params["conv2_b"].astype(f32), OW2)[None, :]  # (1, 128)

    # fc1 weight permuted so torch's (c, h, w) flatten order is reproduced
    # from our (h, w*C+c) pooled layout, split into per-h (64, 120) blocks.
    w1 = params["fc1_w"].astype(f32).reshape(120, OC2, PH2, PW2)
    W1blk = jnp.transpose(w1, (2, 3, 1, 0)).reshape(PH2, PW2 * OC2, 120)
    bf1 = params["fc1_b"].astype(f32)[None, :]
    W2T = params["fc2_w"].astype(f32).T
    bf2 = params["fc2_b"].astype(f32)[None, :]
    W3T = params["fc3_w"].astype(f32).T
    bf3 = params["fc3_b"].astype(f32)[None, :]

    operands = (xm, sc["S1"], M1, b1r, sc["PR1"], sc["PC1"],
                sc["S2"], M2, b2r, sc["PR2"], sc["PC2"],
                sc["G"], W1blk, bf1, W2T, bf2, W3T, bf3)

    def full_spec(a):
        return pl.BlockSpec(tuple(a.shape), lambda i, _z=(0,) * a.ndim: _z)

    kernel = functools.partial(_lenet_kernel, K=K, PH2=PH2)
    return pl.pallas_call(
        kernel,
        out_shape=jax.ShapeDtypeStruct((B, 10), f32),
        grid=(1,),
        in_specs=[full_spec(a) for a in operands],
        out_specs=pl.BlockSpec((B, 10), lambda i: (0, 0)),
        compiler_params=pltpu.CompilerParams(
            dimension_semantics=("arbitrary",)),
    )(*operands)


# ---------------------------------------------------------------------------
# Params / reference
# ---------------------------------------------------------------------------
def init_params(key):
    """Deterministic init mimicking PyTorch default U(-1/sqrt(fan_in), +)."""
    ks = jax.random.split(key, 10)

    def u(k, shape, fan_in):
        bound = 1.0 / jnp.sqrt(jnp.float32(fan_in))
        return jax.random.uniform(k, shape, jnp.float32, -bound, bound)

    return {
        "conv1_w": u(ks[0], (6, 3, 5, 5), 3 * 5 * 5),
        "conv1_b": u(ks[1], (6,), 3 * 5 * 5),
        "conv2_w": u(ks[2], (16, 6, 5, 5), 6 * 5 * 5),
        "conv2_b": u(ks[3], (16,), 6 * 5 * 5),
        "fc1_w": u(ks[4], (120, 256), 256),   # PyTorch Linear shape (out, in)
        "fc1_b": u(ks[5], (120,), 256),
        "fc2_w": u(ks[6], (84, 120), 120),
        "fc2_b": u(ks[7], (84,), 120),
        "fc3_w": u(ks[8], (10, 84), 84),
        "fc3_b": u(ks[9], (10,), 84),
    }


def _reference_forward(x, p):
    """Pure-JAX reference (lax conv) for a sanity check."""
    def conv(x, w, b):
        y = jax.lax.conv_general_dilated(
            x, w, window_strides=(1, 1), padding="VALID",
            dimension_numbers=("NCHW", "OIHW", "NCHW"))
        return jax.nn.relu(y + b[None, :, None, None])

    def pool(x):
        return jax.lax.reduce_window(
            x, -jnp.inf, jax.lax.max, (1, 1, 2, 2), (1, 1, 2, 2), "VALID")

    x = pool(conv(x, p["conv1_w"], p["conv1_b"]))
    x = pool(conv(x, p["conv2_w"], p["conv2_b"]))
    x = x.reshape(-1, 16 * 4 * 4)
    x = jax.nn.relu(x @ p["fc1_w"].T + p["fc1_b"])
    x = jax.nn.relu(x @ p["fc2_w"].T + p["fc2_b"])
    return x @ p["fc3_w"].T + p["fc3_b"]


if __name__ == "__main__":
    key = jax.random.PRNGKey(0)
    pkey, xkey = jax.random.split(key)
    params = init_params(pkey)

    # fc1 expects 16*4*4 => input spatial 28x28 (28 -> 24 -> 12 -> 8 -> 4).
    x = jax.random.normal(xkey, (2, 3, 28, 28), jnp.float32)

    fwd = jax.jit(net_forward)
    out = jax.block_until_ready(fwd(x, params))
    assert out.shape == (2, 10), out.shape

    ref = jax.block_until_ready(_reference_forward(x, params))
    assert jnp.allclose(out, ref, atol=2e-3, rtol=2e-3), float(
        jnp.max(jnp.abs(out - ref)))

    print("KERNEL_OK")
</pallas_src>

<mosaic_0001>
module attributes {stable_mosaic.version = 11 : i64} {
  func.func @_lenet_kernel(%arg0: i32, %arg1: memref<56x84xf32, #tpu.memory_space<vmem>>, %arg2: memref<5x48x56xf32, #tpu.memory_space<vmem>>, %arg3: memref<5x84x144xf32, #tpu.memory_space<vmem>>, %arg4: memref<1x144xf32, #tpu.memory_space<vmem>>, %arg5: memref<2x24x48xf32, #tpu.memory_space<vmem>>, %arg6: memref<2x144x72xf32, #tpu.memory_space<vmem>>, %arg7: memref<5x16x24xf32, #tpu.memory_space<vmem>>, %arg8: memref<5x72x128xf32, #tpu.memory_space<vmem>>, %arg9: memref<1x128xf32, #tpu.memory_space<vmem>>, %arg10: memref<2x8x16xf32, #tpu.memory_space<vmem>>, %arg11: memref<2x128x64xf32, #tpu.memory_space<vmem>>, %arg12: memref<4x2x8xf32, #tpu.memory_space<vmem>>, %arg13: memref<4x64x120xf32, #tpu.memory_space<vmem>>, %arg14: memref<1x120xf32, #tpu.memory_space<vmem>>, %arg15: memref<120x84xf32, #tpu.memory_space<vmem>>, %arg16: memref<1x84xf32, #tpu.memory_space<vmem>>, %arg17: memref<84x10xf32, #tpu.memory_space<vmem>>, %arg18: memref<1x10xf32, #tpu.memory_space<vmem>>, %arg19: memref<2x10xf32, #tpu.memory_space<vmem>>) attributes {dimension_semantics = [#tpu.dimension_semantics<arbitrary>], iteration_bounds = array<i64: 1>, scalar_prefetch = 0 : i64, scratch_operands = 0 : i64, tpu.core_type = #tpu.core_type<tc>, window_params = [{pipeline_mode = #tpu.pipeline_mode<synchronous>, transform_indices = @transform_0, window_bounds = array<i64: 56, 84>}, {pipeline_mode = #tpu.pipeline_mode<synchronous>, transform_indices = @transform_1, window_bounds = array<i64: 5, 48, 56>}, {pipeline_mode = #tpu.pipeline_mode<synchronous>, transform_indices = @transform_2, window_bounds = array<i64: 5, 84, 144>}, {pipeline_mode = #tpu.pipeline_mode<synchronous>, transform_indices = @transform_3, window_bounds = array<i64: 1, 144>}, {pipeline_mode = #tpu.pipeline_mode<synchronous>, transform_indices = @transform_4, window_bounds = array<i64: 2, 24, 48>}, {pipeline_mode = #tpu.pipeline_mode<synchronous>, transform_indices = @transform_5, window_bounds = array<i64: 2, 144, 72>}, {pipeline_mode = #tpu.pipeline_mode<synchronous>, transform_indices = @transform_6, window_bounds = array<i64: 5, 16, 24>}, {pipeline_mode = #tpu.pipeline_mode<synchronous>, transform_indices = @transform_7, window_bounds = array<i64: 5, 72, 128>}, {pipeline_mode = #tpu.pipeline_mode<synchronous>, transform_indices = @transform_8, window_bounds = array<i64: 1, 128>}, {pipeline_mode = #tpu.pipeline_mode<synchronous>, transform_indices = @transform_9, window_bounds = array<i64: 2, 8, 16>}, {pipeline_mode = #tpu.pipeline_mode<synchronous>, transform_indices = @transform_10, window_bounds = array<i64: 2, 128, 64>}, {pipeline_mode = #tpu.pipeline_mode<synchronous>, transform_indices = @transform_11, window_bounds = array<i64: 4, 2, 8>}, {pipeline_mode = #tpu.pipeline_mode<synchronous>, transform_indices = @transform_12, window_bounds = array<i64: 4, 64, 120>}, {pipeline_mode = #tpu.pipeline_mode<synchronous>, transform_indices = @transform_13, window_bounds = array<i64: 1, 120>}, {pipeline_mode = #tpu.pipeline_mode<synchronous>, transform_indices = @transform_14, window_bounds = array<i64: 120, 84>}, {pipeline_mode = #tpu.pipeline_mode<synchronous>, transform_indices = @transform_15, window_bounds = array<i64: 1, 84>}, {pipeline_mode = #tpu.pipeline_mode<synchronous>, transform_indices = @transform_16, window_bounds = array<i64: 84, 10>}, {pipeline_mode = #tpu.pipeline_mode<synchronous>, transform_indices = @transform_17, window_bounds = array<i64: 1, 10>}, {pipeline_mode = #tpu.pipeline_mode<synchronous>, transform_indices = @transform_18, window_bounds = array<i64: 2, 10>}]} {
    %c0 = arith.constant 0 : index
    %c0_0 = arith.constant 0 : index
    %0 = vector.load %arg1[%c0, %c0_0] : memref<56x84xf32, #tpu.memory_space<vmem>>, vector<56x84xf32>
    %c0_1 = arith.constant 0 : index
    %c0_2 = arith.constant 0 : index
    %c0_3 = arith.constant 0 : index
    %1 = vector.load %arg2[%c0_1, %c0_2, %c0_3] : memref<5x48x56xf32, #tpu.memory_space<vmem>>, vector<1x48x56xf32>
    %2 = vector.shape_cast %1 : vector<1x48x56xf32> to vector<48x56xf32>
    %cst = arith.constant dense<0.000000e+00> : vector<48x84xf32>
    %3 = tpu.matmul %2, %0, %cst {dimension_numbers = #tpu.dot_dimension_numbers<[1], [0], [0], [1], [0, 0, 1, 1], [], []>} : vector<48x56xf32>, vector<56x84xf32>, vector<48x84xf32> -> vector<48x84xf32>
    %c0_4 = arith.constant 0 : index
    %c0_5 = arith.constant 0 : index
    %c0_6 = arith.constant 0 : index
    %4 = vector.load %arg3[%c0_4, %c0_5, %c0_6] : memref<5x84x144xf32, #tpu.memory_space<vmem>>, vector<1x84x144xf32>
    %5 = vector.shape_cast %4 : vector<1x84x144xf32> to vector<84x144xf32>
    %cst_7 = arith.constant dense<0.000000e+00> : vector<48x144xf32>
    %6 = tpu.matmul %3, %5, %cst_7 {dimension_numbers = #tpu.dot_dimension_numbers<[1], [0], [0], [1], [0, 0, 1, 1], [], []>} : vector<48x84xf32>, vector<84x144xf32>, vector<48x144xf32> -> vector<48x144xf32>
    %c1 = arith.constant 1 : index
    %c0_8 = arith.constant 0 : index
    %c0_9 = arith.constant 0 : index
    %7 = vector.load %arg2[%c1, %c0_8, %c0_9] : memref<5x48x56xf32, #tpu.memory_space<vmem>>, vector<1x48x56xf32>
    %8 = vector.shape_cast %7 : vector<1x48x56xf32> to vector<48x56xf32>
    %cst_10 = arith.constant dense<0.000000e+00> : vector<48x84xf32>
    %9 = tpu.matmul %8, %0, %cst_10 {dimension_numbers = #tpu.dot_dimension_numbers<[1], [0], [0], [1], [0, 0, 1, 1], [], []>} : vector<48x56xf32>, vector<56x84xf32>, vector<48x84xf32> -> vector<48x84xf32>
    %c1_11 = arith.constant 1 : index
    %c0_12 = arith.constant 0 : index
    %c0_13 = arith.constant 0 : index
    %10 = vector.load %arg3[%c1_11, %c0_12, %c0_13] : memref<5x84x144xf32, #tpu.memory_space<vmem>>, vector<1x84x144xf32>
    %11 = vector.shape_cast %10 : vector<1x84x144xf32> to vector<84x144xf32>
    %cst_14 = arith.constant dense<0.000000e+00> : vector<48x144xf32>
    %12 = tpu.matmul %9, %11, %cst_14 {dimension_numbers = #tpu.dot_dimension_numbers<[1], [0], [0], [1], [0, 0, 1, 1], [], []>} : vector<48x84xf32>, vector<84x144xf32>, vector<48x144xf32> -> vector<48x144xf32>
    %13 = arith.addf %6, %12 : vector<48x144xf32>
    %c2 = arith.constant 2 : index
    %c0_15 = arith.constant 0 : index
    %c0_16 = arith.constant 0 : index
    %14 = vector.load %arg2[%c2, %c0_15, %c0_16] : memref<5x48x56xf32, #tpu.memory_space<vmem>>, vector<1x48x56xf32>
    %15 = vector.shape_cast %14 : vector<1x48x56xf32> to vector<48x56xf32>
    %cst_17 = arith.constant dense<0.000000e+00> : vector<48x84xf32>
    %16 = tpu.matmul %15, %0, %cst_17 {dimension_numbers = #tpu.dot_dimension_numbers<[1], [0], [0], [1], [0, 0, 1, 1], [], []>} : vector<48x56xf32>, vector<56x84xf32>, vector<48x84xf32> -> vector<48x84xf32>
    %c2_18 = arith.constant 2 : index
    %c0_19 = arith.constant 0 : index
    %c0_20 = arith.constant 0 : index
    %17 = vector.load %arg3[%c2_18, %c0_19, %c0_20] : memref<5x84x144xf32, #tpu.memory_space<vmem>>, vector<1x84x144xf32>
    %18 = vector.shape_cast %17 : vector<1x84x144xf32> to vector<84x144xf32>
    %cst_21 = arith.constant dense<0.000000e+00> : vector<48x144xf32>
    %19 = tpu.matmul %16, %18, %cst_21 {dimension_numbers = #tpu.dot_dimension_numbers<[1], [0], [0], [1], [0, 0, 1, 1], [], []>} : vector<48x84xf32>, vector<84x144xf32>, vector<48x144xf32> -> vector<48x144xf32>
    %20 = arith.addf %13, %19 : vector<48x144xf32>
    %c3 = arith.constant 3 : index
    %c0_22 = arith.constant 0 : index
    %c0_23 = arith.constant 0 : index
    %21 = vector.load %arg2[%c3, %c0_22, %c0_23] : memref<5x48x56xf32, #tpu.memory_space<vmem>>, vector<1x48x56xf32>
    %22 = vector.shape_cast %21 : vector<1x48x56xf32> to vector<48x56xf32>
    %cst_24 = arith.constant dense<0.000000e+00> : vector<48x84xf32>
    %23 = tpu.matmul %22, %0, %cst_24 {dimension_numbers = #tpu.dot_dimension_numbers<[1], [0], [0], [1], [0, 0, 1, 1], [], []>} : vector<48x56xf32>, vector<56x84xf32>, vector<48x84xf32> -> vector<48x84xf32>
    %c3_25 = arith.constant 3 : index
    %c0_26 = arith.constant 0 : index
    %c0_27 = arith.constant 0 : index
    %24 = vector.load %arg3[%c3_25, %c0_26, %c0_27] : memref<5x84x144xf32, #tpu.memory_space<vmem>>, vector<1x84x144xf32>
    %25 = vector.shape_cast %24 : vector<1x84x144xf32> to vector<84x144xf32>
    %cst_28 = arith.constant dense<0.000000e+00> : vector<48x144xf32>
    %26 = tpu.matmul %23, %25, %cst_28 {dimension_numbers = #tpu.dot_dimension_numbers<[1], [0], [0], [1], [0, 0, 1, 1], [], []>} : vector<48x84xf32>, vector<84x144xf32>, vector<48x144xf32> -> vector<48x144xf32>
    %27 = arith.addf %20, %26 : vector<48x144xf32>
    %c4 = arith.constant 4 : index
    %c0_29 = arith.constant 0 : index
    %c0_30 = arith.constant 0 : index
    %28 = vector.load %arg2[%c4, %c0_29, %c0_30] : memref<5x48x56xf32, #tpu.memory_space<vmem>>, vector<1x48x56xf32>
    %29 = vector.shape_cast %28 : vector<1x48x56xf32> to vector<48x56xf32>
    %cst_31 = arith.constant dense<0.000000e+00> : vector<48x84xf32>
    %30 = tpu.matmul %29, %0, %cst_31 {dimension_numbers = #tpu.dot_dimension_numbers<[1], [0], [0], [1], [0, 0, 1, 1], [], []>} : vector<48x56xf32>, vector<56x84xf32>, vector<48x84xf32> -> vector<48x84xf32>
    %c4_32 = arith.constant 4 : index
    %c0_33 = arith.constant 0 : index
    %c0_34 = arith.constant 0 : index
    %31 = vector.load %arg3[%c4_32, %c0_33, %c0_34] : memref<5x84x144xf32, #tpu.memory_space<vmem>>, vector<1x84x144xf32>
    %32 = vector.shape_cast %31 : vector<1x84x144xf32> to vector<84x144xf32>
    %cst_35 = arith.constant dense<0.000000e+00> : vector<48x144xf32>
    %33 = tpu.matmul %30, %32, %cst_35 {dimension_numbers = #tpu.dot_dimension_numbers<[1], [0], [0], [1], [0, 0, 1, 1], [], []>} : vector<48x84xf32>, vector<84x144xf32>, vector<48x144xf32> -> vector<48x144xf32>
    %34 = arith.addf %27, %33 : vector<48x144xf32>
    %c0_36 = arith.constant 0 : index
    %c0_37 = arith.constant 0 : index
    %35 = vector.load %arg4[%c0_36, %c0_37] : memref<1x144xf32, #tpu.memory_space<vmem>>, vector<1x144xf32>
    %36 = vector.broadcast %35 : vector<1x144xf32> to vector<48x144xf32>
    %37 = arith.addf %34, %36 : vector<48x144xf32>
    %cst_38 = arith.constant 0.000000e+00 : f32
    %38 = vector.broadcast %cst_38 : f32 to vector<48x144xf32>
    %39 = arith.maximumf %37, %38 : vector<48x144xf32>
    %c0_39 = arith.constant 0 : index
    %c0_40 = arith.constant 0 : index
    %c0_41 = arith.constant 0 : index
    %40 = vector.load %arg5[%c0_39, %c0_40, %c0_41] : memref<2x24x48xf32, #tpu.memory_space<vmem>>, vector<1x24x48xf32>
    %41 = vector.shape_cast %40 : vector<1x24x48xf32> to vector<24x48xf32>
    %cst_42 = arith.constant dense<0.000000e+00> : vector<24x144xf32>
    %42 = tpu.matmul %41, %39, %cst_42 {dimension_numbers = #tpu.dot_dimension_numbers<[1], [0], [0], [1], [0, 0, 1, 1], [], []>} : vector<24x48xf32>, vector<48x144xf32>, vector<24x144xf32> -> vector<24x144xf32>
    %c1_43 = arith.constant 1 : index
    %c0_44 = arith.constant 0 : index
    %c0_45 = arith.constant 0 : index
    %43 = vector.load %arg5[%c1_43, %c0_44, %c0_45] : memref<2x24x48xf32, #tpu.memory_space<vmem>>, vector<1x24x48xf32>
    %44 = vector.shape_cast %43 : vector<1x24x48xf32> to vector<24x48xf32>
    %cst_46 = arith.constant dense<0.000000e+00> : vector<24x144xf32>
    %45 = tpu.matmul %44, %39, %cst_46 {dimension_numbers = #tpu.dot_dimension_numbers<[1], [0], [0], [1], [0, 0, 1, 1], [], []>} : vector<24x48xf32>, vector<48x144xf32>, vector<24x144xf32> -> vector<24x144xf32>
    %46 = arith.maximumf %42, %45 : vector<24x144xf32>
    %c0_47 = arith.constant 0 : index
    %c0_48 = arith.constant 0 : index
    %c0_49 = arith.constant 0 : index
    %47 = vector.load %arg6[%c0_47, %c0_48, %c0_49] : memref<2x144x72xf32, #tpu.memory_space<vmem>>, vector<1x144x72xf32>
    %48 = vector.shape_cast %47 : vector<1x144x72xf32> to vector<144x72xf32>
    %cst_50 = arith.constant dense<0.000000e+00> : vector<24x72xf32>
    %49 = tpu.matmul %46, %48, %cst_50 {dimension_numbers = #tpu.dot_dimension_numbers<[1], [0], [0], [1], [0, 0, 1, 1], [], []>} : vector<24x144xf32>, vector<144x72xf32>, vector<24x72xf32> -> vector<24x72xf32>
    %c1_51 = arith.constant 1 : index
    %c0_52 = arith.constant 0 : index
    %c0_53 = arith.constant 0 : index
    %50 = vector.load %arg6[%c1_51, %c0_52, %c0_53] : memref<2x144x72xf32, #tpu.memory_space<vmem>>, vector<1x144x72xf32>
    %51 = vector.shape_cast %50 : vector<1x144x72xf32> to vector<144x72xf32>
    %cst_54 = arith.constant dense<0.000000e+00> : vector<24x72xf32>
    %52 = tpu.matmul %46, %51, %cst_54 {dimension_numbers = #tpu.dot_dimension_numbers<[1], [0], [0], [1], [0, 0, 1, 1], [], []>} : vector<24x144xf32>, vector<144x72xf32>, vector<24x72xf32> -> vector<24x72xf32>
    %53 = arith.maximumf %49, %52 : vector<24x72xf32>
    %c0_55 = arith.constant 0 : index
    %c0_56 = arith.constant 0 : index
    %c0_57 = arith.constant 0 : index
    %54 = vector.load %arg7[%c0_55, %c0_56, %c0_57] : memref<5x16x24xf32, #tpu.memory_space<vmem>>, vector<1x16x24xf32>
    %55 = vector.shape_cast %54 : vector<1x16x24xf32> to vector<16x24xf32>
    %cst_58 = arith.constant dense<0.000000e+00> : vector<16x72xf32>
    %56 = tpu.matmul %55, %53, %cst_58 {dimension_numbers = #tpu.dot_dimension_numbers<[1], [0], [0], [1], [0, 0, 1, 1], [], []>} : vector<16x24xf32>, vector<24x72xf32>, vector<16x72xf32> -> vector<16x72xf32>
    %c0_59 = arith.constant 0 : index
    %c0_60 = arith.constant 0 : index
    %c0_61 = arith.constant 0 : index
    %57 = vector.load %arg8[%c0_59, %c0_60, %c0_61] : memref<5x72x128xf32, #tpu.memory_space<vmem>>, vector<1x72x128xf32>
    %58 = vector.shape_cast %57 : vector<1x72x128xf32> to vector<72x128xf32>
    %cst_62 = arith.constant dense<0.000000e+00> : vector<16x128xf32>
    %59 = tpu.matmul %56, %58, %cst_62 {dimension_numbers = #tpu.dot_dimension_numbers<[1], [0], [0], [1], [0, 0, 1, 1], [], []>} : vector<16x72xf32>, vector<72x128xf32>, vector<16x128xf32> -> vector<16x128xf32>
    %c1_63 = arith.constant 1 : index
    %c0_64 = arith.constant 0 : index
    %c0_65 = arith.constant 0 : index
    %60 = vector.load %arg7[%c1_63, %c0_64, %c0_65] : memref<5x16x24xf32, #tpu.memory_space<vmem>>, vector<1x16x24xf32>
    %61 = vector.shape_cast %60 : vector<1x16x24xf32> to vector<16x24xf32>
    %cst_66 = arith.constant dense<0.000000e+00> : vector<16x72xf32>
    %62 = tpu.matmul %61, %53, %cst_66 {dimension_numbers = #tpu.dot_dimension_numbers<[1], [0], [0], [1], [0, 0, 1, 1], [], []>} : vector<16x24xf32>, vector<24x72xf32>, vector<16x72xf32> -> vector<16x72xf32>
    %c1_67 = arith.constant 1 : index
    %c0_68 = arith.constant 0 : index
    %c0_69 = arith.constant 0 : index
    %63 = vector.load %arg8[%c1_67, %c0_68, %c0_69] : memref<5x72x128xf32, #tpu.memory_space<vmem>>, vector<1x72x128xf32>
    %64 = vector.shape_cast %63 : vector<1x72x128xf32> to vector<72x128xf32>
    %cst_70 = arith.constant dense<0.000000e+00> : vector<16x128xf32>
    %65 = tpu.matmul %62, %64, %cst_70 {dimension_numbers = #tpu.dot_dimension_numbers<[1], [0], [0], [1], [0, 0, 1, 1], [], []>} : vector<16x72xf32>, vector<72x128xf32>, vector<16x128xf32> -> vector<16x128xf32>
    %66 = arith.addf %59, %65 : vector<16x128xf32>
    %c2_71 = arith.constant 2 : index
    %c0_72 = arith.constant 0 : index
    %c0_73 = arith.constant 0 : index
    %67 = vector.load %arg7[%c2_71, %c0_72, %c0_73] : memref<5x16x24xf32, #tpu.memory_space<vmem>>, vector<1x16x24xf32>
    %68 = vector.shape_cast %67 : vector<1x16x24xf32> to vector<16x24xf32>
    %cst_74 = arith.constant dense<0.000000e+00> : vector<16x72xf32>
    %69 = tpu.matmul %68, %53, %cst_74 {dimension_numbers = #tpu.dot_dimension_numbers<[1], [0], [0], [1], [0, 0, 1, 1], [], []>} : vector<16x24xf32>, vector<24x72xf32>, vector<16x72xf32> -> vector<16x72xf32>
    %c2_75 = arith.constant 2 : index
    %c0_76 = arith.constant 0 : index
    %c0_77 = arith.constant 0 : index
    %70 = vector.load %arg8[%c2_75, %c0_76, %c0_77] : memref<5x72x128xf32, #tpu.memory_space<vmem>>, vector<1x72x128xf32>
    %71 = vector.shape_cast %70 : vector<1x72x128xf32> to vector<72x128xf32>
    %cst_78 = arith.constant dense<0.000000e+00> : vector<16x128xf32>
    %72 = tpu.matmul %69, %71, %cst_78 {dimension_numbers = #tpu.dot_dimension_numbers<[1], [0], [0], [1], [0, 0, 1, 1], [], []>} : vector<16x72xf32>, vector<72x128xf32>, vector<16x128xf32> -> vector<16x128xf32>
    %73 = arith.addf %66, %72 : vector<16x128xf32>
    %c3_79 = arith.constant 3 : index
    %c0_80 = arith.constant 0 : index
    %c0_81 = arith.constant 0 : index
    %74 = vector.load %arg7[%c3_79, %c0_80, %c0_81] : memref<5x16x24xf32, #tpu.memory_space<vmem>>, vector<1x16x24xf32>
    %75 = vector.shape_cast %74 : vector<1x16x24xf32> to vector<16x24xf32>
    %cst_82 = arith.constant dense<0.000000e+00> : vector<16x72xf32>
    %76 = tpu.matmul %75, %53, %cst_82 {dimension_numbers = #tpu.dot_dimension_numbers<[1], [0], [0], [1], [0, 0, 1, 1], [], []>} : vector<16x24xf32>, vector<24x72xf32>, vector<16x72xf32> -> vector<16x72xf32>
    %c3_83 = arith.constant 3 : index
    %c0_84 = arith.constant 0 : index
    %c0_85 = arith.constant 0 : index
    %77 = vector.load %arg8[%c3_83, %c0_84, %c0_85] : memref<5x72x128xf32, #tpu.memory_space<vmem>>, vector<1x72x128xf32>
    %78 = vector.shape_cast %77 : vector<1x72x128xf32> to vector<72x128xf32>
    %cst_86 = arith.constant dense<0.000000e+00> : vector<16x128xf32>
    %79 = tpu.matmul %76, %78, %cst_86 {dimension_numbers = #tpu.dot_dimension_numbers<[1], [0], [0], [1], [0, 0, 1, 1], [], []>} : vector<16x72xf32>, vector<72x128xf32>, vector<16x128xf32> -> vector<16x128xf32>
    %80 = arith.addf %73, %79 : vector<16x128xf32>
    %c4_87 = arith.constant 4 : index
    %c0_88 = arith.constant 0 : index
    %c0_89 = arith.constant 0 : index
    %81 = vector.load %arg7[%c4_87, %c0_88, %c0_89] : memref<5x16x24xf32, #tpu.memory_space<vmem>>, vector<1x16x24xf32>
    %82 = vector.shape_cast %81 : vector<1x16x24xf32> to vector<16x24xf32>
    %cst_90 = arith.constant dense<0.000000e+00> : vector<16x72xf32>
    %83 = tpu.matmul %82, %53, %cst_90 {dimension_numbers = #tpu.dot_dimension_numbers<[1], [0], [0], [1], [0, 0, 1, 1], [], []>} : vector<16x24xf32>, vector<24x72xf32>, vector<16x72xf32> -> vector<16x72xf32>
    %c4_91 = arith.constant 4 : index
    %c0_92 = arith.constant 0 : index
    %c0_93 = arith.constant 0 : index
    %84 = vector.load %arg8[%c4_91, %c0_92, %c0_93] : memref<5x72x128xf32, #tpu.memory_space<vmem>>, vector<1x72x128xf32>
    %85 = vector.shape_cast %84 : vector<1x72x128xf32> to vector<72x128xf32>
    %cst_94 = arith.constant dense<0.000000e+00> : vector<16x128xf32>
    %86 = tpu.matmul %83, %85, %cst_94 {dimension_numbers = #tpu.dot_dimension_numbers<[1], [0], [0], [1], [0, 0, 1, 1], [], []>} : vector<16x72xf32>, vector<72x128xf32>, vector<16x128xf32> -> vector<16x128xf32>
    %87 = arith.addf %80, %86 : vector<16x128xf32>
    %c0_95 = arith.constant 0 : index
    %c0_96 = arith.constant 0 : index
    %88 = vector.load %arg9[%c0_95, %c0_96] : memref<1x128xf32, #tpu.memory_space<vmem>>, vector<1x128xf32>
    %89 = vector.broadcast %88 : vector<1x128xf32> to vector<16x128xf32>
    %90 = arith.addf %87, %89 : vector<16x128xf32>
    %cst_97 = arith.constant 0.000000e+00 : f32
    %91 = vector.broadcast %cst_97 : f32 to vector<16x128xf32>
    %92 = arith.maximumf %90, %91 : vector<16x128xf32>
    %c0_98 = arith.constant 0 : index
    %c0_99 = arith.constant 0 : index
    %c0_100 = arith.constant 0 : index
    %93 = vector.load %arg10[%c0_98, %c0_99, %c0_100] : memref<2x8x16xf32, #tpu.memory_space<vmem>>, vector<1x8x16xf32>
    %94 = vector.shape_cast %93 : vector<1x8x16xf32> to vector<8x16xf32>
    %cst_101 = arith.constant dense<0.000000e+00> : vector<8x128xf32>
    %95 = tpu.matmul %94, %92, %cst_101 {dimension_numbers = #tpu.dot_dimension_numbers<[1], [0], [0], [1], [0, 0, 1, 1], [], []>} : vector<8x16xf32>, vector<16x128xf32>, vector<8x128xf32> -> vector<8x128xf32>
    %c1_102 = arith.constant 1 : index
    %c0_103 = arith.constant 0 : index
    %c0_104 = arith.constant 0 : index
    %96 = vector.load %arg10[%c1_102, %c0_103, %c0_104] : memref<2x8x16xf32, #tpu.memory_space<vmem>>, vector<1x8x16xf32>
    %97 = vector.shape_cast %96 : vector<1x8x16xf32> to vector<8x16xf32>
    %cst_105 = arith.constant dense<0.000000e+00> : vector<8x128xf32>
    %98 = tpu.matmul %97, %92, %cst_105 {dimension_numbers = #tpu.dot_dimension_numbers<[1], [0], [0], [1], [0, 0, 1, 1], [], []>} : vector<8x16xf32>, vector<16x128xf32>, vector<8x128xf32> -> vector<8x128xf32>
    %99 = arith.maximumf %95, %98 : vector<8x128xf32>
    %c0_106 = arith.constant 0 : index
    %c0_107 = arith.constant 0 : index
    %c0_108 = arith.constant 0 : index
    %100 = vector.load %arg11[%c0_106, %c0_107, %c0_108] : memref<2x128x64xf32, #tpu.memory_space<vmem>>, vector<1x128x64xf32>
    %101 = vector.shape_cast %100 : vector<1x128x64xf32> to vector<128x64xf32>
    %cst_109 = arith.constant dense<0.000000e+00> : vector<8x64xf32>
    %102 = tpu.matmul %99, %101, %cst_109 {dimension_numbers = #tpu.dot_dimension_numbers<[1], [0], [0], [1], [0, 0, 1, 1], [], []>} : vector<8x128xf32>, vector<128x64xf32>, vector<8x64xf32> -> vector<8x64xf32>
    %c1_110 = arith.constant 1 : index
    %c0_111 = arith.constant 0 : index
    %c0_112 = arith.constant 0 : index
    %103 = vector.load %arg11[%c1_110, %c0_111, %c0_112] : memref<2x128x64xf32, #tpu.memory_space<vmem>>, vector<1x128x64xf32>
    %104 = vector.shape_cast %103 : vector<1x128x64xf32> to vector<128x64xf32>
    %cst_113 = arith.constant dense<0.000000e+00> : vector<8x64xf32>
    %105 = tpu.matmul %99, %104, %cst_113 {dimension_numbers = #tpu.dot_dimension_numbers<[1], [0], [0], [1], [0, 0, 1, 1], [], []>} : vector<8x128xf32>, vector<128x64xf32>, vector<8x64xf32> -> vector<8x64xf32>
    %106 = arith.maximumf %102, %105 : vector<8x64xf32>
    %c0_114 = arith.constant 0 : index
    %c0_115 = arith.constant 0 : index
    %c0_116 = arith.constant 0 : index
    %107 = vector.load %arg12[%c0_114, %c0_115, %c0_116] : memref<4x2x8xf32, #tpu.memory_space<vmem>>, vector<1x2x8xf32>
    %108 = vector.shape_cast %107 : vector<1x2x8xf32> to vector<2x8xf32>
    %cst_117 = arith.constant dense<0.000000e+00> : vector<2x64xf32>
    %109 = tpu.matmul %108, %106, %cst_117 {dimension_numbers = #tpu.dot_dimension_numbers<[1], [0], [0], [1], [0, 0, 1, 1], [], []>} : vector<2x8xf32>, vector<8x64xf32>, vector<2x64xf32> -> vector<2x64xf32>
    %c0_118 = arith.constant 0 : index
    %c0_119 = arith.constant 0 : index
    %c0_120 = arith.constant 0 : index
    %110 = vector.load %arg13[%c0_118, %c0_119, %c0_120] : memref<4x64x120xf32, #tpu.memory_space<vmem>>, vector<1x64x120xf32>
    %111 = vector.shape_cast %110 : vector<1x64x120xf32> to vector<64x120xf32>
    %cst_121 = arith.constant dense<0.000000e+00> : vector<2x120xf32>
    %112 = tpu.matmul %109, %111, %cst_121 {dimension_numbers = #tpu.dot_dimension_numbers<[1], [0], [0], [1], [0, 0, 1, 1], [], []>} : vector<2x64xf32>, vector<64x120xf32>, vector<2x120xf32> -> vector<2x120xf32>
    %c1_122 = arith.constant 1 : index
    %c0_123 = arith.constant 0 : index
    %c0_124 = arith.constant 0 : index
    %113 = vector.load %arg12[%c1_122, %c0_123, %c0_124] : memref<4x2x8xf32, #tpu.memory_space<vmem>>, vector<1x2x8xf32>
    %114 = vector.shape_cast %113 : vector<1x2x8xf32> to vector<2x8xf32>
    %cst_125 = arith.constant dense<0.000000e+00> : vector<2x64xf32>
    %115 = tpu.matmul %114, %106, %cst_125 {dimension_numbers = #tpu.dot_dimension_numbers<[1], [0], [0], [1], [0, 0, 1, 1], [], []>} : vector<2x8xf32>, vector<8x64xf32>, vector<2x64xf32> -> vector<2x64xf32>
    %c1_126 = arith.constant 1 : index
    %c0_127 = arith.constant 0 : index
    %c0_128 = arith.constant 0 : index
    %116 = vector.load %arg13[%c1_126, %c0_127, %c0_128] : memref<4x64x120xf32, #tpu.memory_space<vmem>>, vector<1x64x120xf32>
    %117 = vector.shape_cast %116 : vector<1x64x120xf32> to vector<64x120xf32>
    %cst_129 = arith.constant dense<0.000000e+00> : vector<2x120xf32>
    %118 = tpu.matmul %115, %117, %cst_129 {dimension_numbers = #tpu.dot_dimension_numbers<[1], [0], [0], [1], [0, 0, 1, 1], [], []>} : vector<2x64xf32>, vector<64x120xf32>, vector<2x120xf32> -> vector<2x120xf32>
    %119 = arith.addf %112, %118 : vector<2x120xf32>
    %c2_130 = arith.constant 2 : index
    %c0_131 = arith.constant 0 : index
    %c0_132 = arith.constant 0 : index
    %120 = vector.load %arg12[%c2_130, %c0_131, %c0_132] : memref<4x2x8xf32, #tpu.memory_space<vmem>>, vector<1x2x8xf32>
    %121 = vector.shape_cast %120 : vector<1x2x8xf32> to vector<2x8xf32>
    %cst_133 = arith.constant dense<0.000000e+00> : vector<2x64xf32>
    %122 = tpu.matmul %121, %106, %cst_133 {dimension_numbers = #tpu.dot_dimension_numbers<[1], [0], [0], [1], [0, 0, 1, 1], [], []>} : vector<2x8xf32>, vector<8x64xf32>, vector<2x64xf32> -> vector<2x64xf32>
    %c2_134 = arith.constant 2 : index
    %c0_135 = arith.constant 0 : index
    %c0_136 = arith.constant 0 : index
    %123 = vector.load %arg13[%c2_134, %c0_135, %c0_136] : memref<4x64x120xf32, #tpu.memory_space<vmem>>, vector<1x64x120xf32>
    %124 = vector.shape_cast %123 : vector<1x64x120xf32> to vector<64x120xf32>
    %cst_137 = arith.constant dense<0.000000e+00> : vector<2x120xf32>
    %125 = tpu.matmul %122, %124, %cst_137 {dimension_numbers = #tpu.dot_dimension_numbers<[1], [0], [0], [1], [0, 0, 1, 1], [], []>} : vector<2x64xf32>, vector<64x120xf32>, vector<2x120xf32> -> vector<2x120xf32>
    %126 = arith.addf %119, %125 : vector<2x120xf32>
    %c3_138 = arith.constant 3 : index
    %c0_139 = arith.constant 0 : index
    %c0_140 = arith.constant 0 : index
    %127 = vector.load %arg12[%c3_138, %c0_139, %c0_140] : memref<4x2x8xf32, #tpu.memory_space<vmem>>, vector<1x2x8xf32>
    %128 = vector.shape_cast %127 : vector<1x2x8xf32> to vector<2x8xf32>
    %cst_141 = arith.constant dense<0.000000e+00> : vector<2x64xf32>
    %129 = tpu.matmul %128, %106, %cst_141 {dimension_numbers = #tpu.dot_dimension_numbers<[1], [0], [0], [1], [0, 0, 1, 1], [], []>} : vector<2x8xf32>, vector<8x64xf32>, vector<2x64xf32> -> vector<2x64xf32>
    %c3_142 = arith.constant 3 : index
    %c0_143 = arith.constant 0 : index
    %c0_144 = arith.constant 0 : index
    %130 = vector.load %arg13[%c3_142, %c0_143, %c0_144] : memref<4x64x120xf32, #tpu.memory_space<vmem>>, vector<1x64x120xf32>
    %131 = vector.shape_cast %130 : vector<1x64x120xf32> to vector<64x120xf32>
    %cst_145 = arith.constant dense<0.000000e+00> : vector<2x120xf32>
    %132 = tpu.matmul %129, %131, %cst_145 {dimension_numbers = #tpu.dot_dimension_numbers<[1], [0], [0], [1], [0, 0, 1, 1], [], []>} : vector<2x64xf32>, vector<64x120xf32>, vector<2x120xf32> -> vector<2x120xf32>
    %133 = arith.addf %126, %132 : vector<2x120xf32>
    %c0_146 = arith.constant 0 : index
    %c0_147 = arith.constant 0 : index
    %134 = vector.load %arg14[%c0_146, %c0_147] : memref<1x120xf32, #tpu.memory_space<vmem>>, vector<1x120xf32>
    %135 = vector.broadcast %134 : vector<1x120xf32> to vector<2x120xf32>
    %136 = arith.addf %133, %135 : vector<2x120xf32>
    %cst_148 = arith.constant 0.000000e+00 : f32
    %137 = vector.broadcast %cst_148 : f32 to vector<2x120xf32>
    %138 = arith.maximumf %136, %137 : vector<2x120xf32>
    %c0_149 = arith.constant 0 : index
    %c0_150 = arith.constant 0 : index
    %139 = vector.load %arg15[%c0_149, %c0_150] : memref<120x84xf32, #tpu.memory_space<vmem>>, vector<120x84xf32>
    %cst_151 = arith.constant dense<0.000000e+00> : vector<2x84xf32>
    %140 = tpu.matmul %138, %139, %cst_151 {dimension_numbers = #tpu.dot_dimension_numbers<[1], [0], [0], [1], [0, 0, 1, 1], [], []>} : vector<2x120xf32>, vector<120x84xf32>, vector<2x84xf32> -> vector<2x84xf32>
    %c0_152 = arith.constant 0 : index
    %c0_153 = arith.constant 0 : index
    %141 = vector.load %arg16[%c0_152, %c0_153] : memref<1x84xf32, #tpu.memory_space<vmem>>, vector<1x84xf32>
    %142 = vector.broadcast %141 : vector<1x84xf32> to vector<2x84xf32>
    %143 = arith.addf %140, %142 : vector<2x84xf32>
    %cst_154 = arith.constant 0.000000e+00 : f32
    %144 = vector.broadcast %cst_154 : f32 to vector<2x84xf32>
    %145 = arith.maximumf %143, %144 : vector<2x84xf32>
    %c0_155 = arith.constant 0 : index
    %c0_156 = arith.constant 0 : index
    %146 = vector.load %arg17[%c0_155, %c0_156] : memref<84x10xf32, #tpu.memory_space<vmem>>, vector<84x10xf32>
    %cst_157 = arith.constant dense<0.000000e+00> : vector<2x10xf32>
    %147 = tpu.matmul %145, %146, %cst_157 {dimension_numbers = #tpu.dot_dimension_numbers<[1], [0], [0], [1], [0, 0, 1, 1], [], []>} : vector<2x84xf32>, vector<84x10xf32>, vector<2x10xf32> -> vector<2x10xf32>
    %c0_158 = arith.constant 0 : index
    %c0_159 = arith.constant 0 : index
    %148 = vector.load %arg18[%c0_158, %c0_159] : memref<1x10xf32, #tpu.memory_space<vmem>>, vector<1x10xf32>
    %149 = vector.broadcast %148 : vector<1x10xf32> to vector<2x10xf32>
    %150 = arith.addf %147, %149 : vector<2x10xf32>
    %c0_160 = arith.constant 0 : index
    %c0_161 = arith.constant 0 : index
    %151 = vector.load %arg19[%c0_160, %c0_161] : memref<2x10xf32, #tpu.memory_space<vmem>>, vector<2x10xf32>
    tpu.vector_store %arg19[%c0_160, %c0_161], %150 {strides = array<i32>} : memref<2x10xf32, #tpu.memory_space<vmem>>, vector<2x10xf32>,
    return
  }
  func.func @transform_0(%arg0: i32) -> (i32, i32) {
    %c0_i32 = arith.constant 0 : i32
    %c0_i32_0 = arith.constant 0 : i32
    %c0_i32_1 = arith.constant 0 : i32
    return %c0_i32, %c0_i32_0 : i32, i32
  }
  func.func @transform_1(%arg0: i32) -> (i32, i32, i32) {
    %c0_i32 = arith.constant 0 : i32
    %c0_i32_0 = arith.constant 0 : i32
    %c0_i32_1 = arith.constant 0 : i32
    %c0_i32_2 = arith.constant 0 : i32
    return %c0_i32, %c0_i32_0, %c0_i32_1 : i32, i32, i32
  }
  func.func @transform_2(%arg0: i32) -> (i32, i32, i32) {
    %c0_i32 = arith.constant 0 : i32
    %c0_i32_0 = arith.constant 0 : i32
    %c0_i32_1 = arith.constant 0 : i32
    %c0_i32_2 = arith.constant 0 : i32
    return %c0_i32, %c0_i32_0, %c0_i32_1 : i32, i32, i32
  }
  func.func @transform_3(%arg0: i32) -> (i32, i32) {
    %c0_i32 = arith.constant 0 : i32
    %c0_i32_0 = arith.constant 0 : i32
    %c0_i32_1 = arith.constant 0 : i32
    return %c0_i32, %c0_i32_0 : i32, i32
  }
  func.func @transform_4(%arg0: i32) -> (i32, i32, i32) {
    %c0_i32 = arith.constant 0 : i32
    %c0_i32_0 = arith.constant 0 : i32
    %c0_i32_1 = arith.constant 0 : i32
    %c0_i32_2 = arith.constant 0 : i32
    return %c0_i32, %c0_i32_0, %c0_i32_1 : i32, i32, i32
  }
  func.func @transform_5(%arg0: i32) -> (i32, i32, i32) {
    %c0_i32 = arith.constant 0 : i32
    %c0_i32_0 = arith.constant 0 : i32
    %c0_i32_1 = arith.constant 0 : i32
    %c0_i32_2 = arith.constant 0 : i32
    return %c0_i32, %c0_i32_0, %c0_i32_1 : i32, i32, i32
  }
  func.func @transform_6(%arg0: i32) -> (i32, i32, i32) {
    %c0_i32 = arith.constant 0 : i32
    %c0_i32_0 = arith.constant 0 : i32
    %c0_i32_1 = arith.constant 0 : i32
    %c0_i32_2 = arith.constant 0 : i32
    return %c0_i32, %c0_i32_0, %c0_i32_1 : i32, i32, i32
  }
  func.func @transform_7(%arg0: i32) -> (i32, i32, i32) {
    %c0_i32 = arith.constant 0 : i32
    %c0_i32_0 = arith.constant 0 : i32
    %c0_i32_1 = arith.constant 0 : i32
    %c0_i32_2 = arith.constant 0 : i32
    return %c0_i32, %c0_i32_0, %c0_i32_1 : i32, i32, i32
  }
  func.func @transform_8(%arg0: i32) -> (i32, i32) {
    %c0_i32 = arith.constant 0 : i32
    %c0_i32_0 = arith.constant 0 : i32
    %c0_i32_1 = arith.constant 0 : i32
    return %c0_i32, %c0_i32_0 : i32, i32
  }
  func.func @transform_9(%arg0: i32) -> (i32, i32, i32) {
    %c0_i32 = arith.constant 0 : i32
    %c0_i32_0 = arith.constant 0 : i32
    %c0_i32_1 = arith.constant 0 : i32
    %c0_i32_2 = arith.constant 0 : i32
    return %c0_i32, %c0_i32_0, %c0_i32_1 : i32, i32, i32
  }
  func.func @transform_10(%arg0: i32) -> (i32, i32, i32) {
    %c0_i32 = arith.constant 0 : i32
    %c0_i32_0 = arith.constant 0 : i32
    %c0_i32_1 = arith.constant 0 : i32
    %c0_i32_2 = arith.constant 0 : i32
    return %c0_i32, %c0_i32_0, %c0_i32_1 : i32, i32, i32
  }
  func.func @transform_11(%arg0: i32) -> (i32, i32, i32) {
    %c0_i32 = arith.constant 0 : i32
    %c0_i32_0 = arith.constant 0 : i32
    %c0_i32_1 = arith.constant 0 : i32
    %c0_i32_2 = arith.constant 0 : i32
    return %c0_i32, %c0_i32_0, %c0_i32_1 : i32, i32, i32
  }
  func.func @transform_12(%arg0: i32) -> (i32, i32, i32) {
    %c0_i32 = arith.constant 0 : i32
    %c0_i32_0 = arith.constant 0 : i32
    %c0_i32_1 = arith.constant 0 : i32
    %c0_i32_2 = arith.constant 0 : i32
    return %c0_i32, %c0_i32_0, %c0_i32_1 : i32, i32, i32
  }
  func.func @transform_13(%arg0: i32) -> (i32, i32) {
    %c0_i32 = arith.constant 0 : i32
    %c0_i32_0 = arith.constant 0 : i32
    %c0_i32_1 = arith.constant 0 : i32
    return %c0_i32, %c0_i32_0 : i32, i32
  }
  func.func @transform_14(%arg0: i32) -> (i32, i32) {
    %c0_i32 = arith.constant 0 : i32
    %c0_i32_0 = arith.constant 0 : i32
    %c0_i32_1 = arith.constant 0 : i32
    return %c0_i32, %c0_i32_0 : i32, i32
  }
  func.func @transform_15(%arg0: i32) -> (i32, i32) {
    %c0_i32 = arith.constant 0 : i32
    %c0_i32_0 = arith.constant 0 : i32
    %c0_i32_1 = arith.constant 0 : i32
    return %c0_i32, %c0_i32_0 : i32, i32
  }
  func.func @transform_16(%arg0: i32) -> (i32, i32) {
    %c0_i32 = arith.constant 0 : i32
    %c0_i32_0 = arith.constant 0 : i32
    %c0_i32_1 = arith.constant 0 : i32
    return %c0_i32, %c0_i32_0 : i32, i32
  }
  func.func @transform_17(%arg0: i32) -> (i32, i32) {
    %c0_i32 = arith.constant 0 : i32
    %c0_i32_0 = arith.constant 0 : i32
    %c0_i32_1 = arith.constant 0 : i32
    return %c0_i32, %c0_i32_0 : i32, i32
  }
  func.func @transform_18(%arg0: i32) -> (i32, i32) {
    %c0_i32 = arith.constant 0 : i32
    %c0_i32_0 = arith.constant 0 : i32
    %c0_i32_1 = arith.constant 0 : i32
    return %c0_i32, %c0_i32_0 : i32, i32
  }
}

</mosaic_0001>

<bundles_post_ra>
// kernel: tile.13
= control target key start
LH: loop header
LB: loop body
LE: loop exit
PB: predicated region body
PF: predicated region fallthrough
CT: control target
= control target key end

     0   :  { %s34_s0 = inlined_call_operand.vmem [shape: f32[6], index: 0, kind: input, shape index: {}]   ;;  %s35_s1 = inlined_call_operand.vmem [shape: f32[24,6], index: 1, kind: output, shape index: {}]  }
   0x1   :  { %v4_v0 = vld [vmem:[%s34_s0] ss:$0 sm:$0xff] }
   0x2   :  { %5 = vst [vmem:[%s35_s1] sm:$0xff] %v4_v0  ;;  %10 = vst [vmem:[%s35_s1 + $0x8] sm:$0xff] %v4_v0 }
   0x3   :  { %11 = vst [vmem:[%s35_s1 + $0x10] sm:$0xff] %v4_v0 }

// kernel: tile.14
= control target key start
LH: loop header
LB: loop body
LE: loop exit
PB: predicated region body
PF: predicated region fallthrough
CT: control target
= control target key end

     0   :  { %vm9_vm0 = vcmask 15360   ;;  %s211_s12 = smov 126   ;;  %s212_s13 = smov 114   ;;  %vm3_vm1 = vcmask 48128   ;;  %vm13_vm2 = vcmask 31744   ;;  %vm16_vm3 = vcmask 1048560   ;;  %s325_s0 = inlined_call_operand.vmem [shape: f32[24,6], index: 0, kind: input, shape index: {}]   ;;  %s326_s1 = inlined_call_operand.vmem [shape: f32[1,144], index: 1, kind: output, shape index: {}]  }
   0x1   :  { %v163_v0 = vld [vmem:[%s325_s0 + $0x15] sm:$0x1]   ;;  %v166_v3 = vld [vmem:[%s325_s0 + $0x13] sm:$0x1]   ;;  %v165_v4 = vld [vmem:[%s325_s0 + $0x14] sm:$0x1]  }
   0x2   :  { %v164_v1 = vld [vmem:[%s325_s0 + $0x15] sm:$0x1]   ;;  %26 = vrot.lane.b32.xlu1 %v166_v3, %s212_s13  ;;  %v167_v5 = vld [vmem:[%s325_s0 + $0x12] sm:$0x1]   ;;  %s213_s18 = smov 120   ;;  %s214_s19 = smov 108  }
   0x3   :  { %v10_v2 = vsel %vm9_vm0, %v164_v1, %v163_v0  ;;  %v168_v6 = vld [vmem:[%s325_s0 + $0x11] sm:$0x1]   ;;  %v169_v7 = vld [vmem:[%s325_s0 + $0x10] sm:$0x1]   ;;  %s215_s24 = smov 102   ;;  %s216_s25 = smov 96  }
   0x4   :  { %11 = vrot.lane.b32.xlu0 %v10_v2, %s211_s12  ;;  %v170_v8 = vld [vmem:[%s325_s0 + $0xf] sm:$0x1]   ;;  %v171_v9 = vld [vmem:[%s325_s0 + $0xe] sm:$0x1]   ;;  %v2_v10 = vld [vmem:[%s325_s0] sm:$0x1]  }
   0x5   :  { %4 = vst.msk [vmem:[#allocation0] sm:$0x1] %vm3_vm1, %v2_v10   ;;  %s217_s3 = smov 90   ;;  %s218_s4 = smov 84   ;;  %v172_v11 = vld [vmem:[%s325_s0 + $0xd] sm:$0x1]  }
   0x6   :  { %32 = vrot.lane.b32.xlu1 %v167_v5, %s214_s19  ;;  %v173_v12 = vld [vmem:[%s325_s0 + $0xc] sm:$0x1]   ;;  %s219_s9 = smov 78   ;;  %s220_s10 = smov 72   ;;  %v174_v13 = vld [vmem:[%s325_s0 + $0xb] sm:$0x1]  }
   0x7   :  { %v175_v14 = vld [vmem:[%s325_s0 + $0xa] sm:$0x1]   ;;  %s221_s15 = smov 66   ;;  %s222_s16 = smov 60   ;;  %v176_v15 = vld [vmem:[%s325_s0 + $0x9] sm:$0x1]  }
   0x8   :  { %20 = vrot.lane.b32.xlu0 %v165_v4, %s213_s18  ;;  %v177_v16 = vld [vmem:[%s325_s0 + $0x8] sm:$0x1]   ;;  %s223_s21 = smov 54   ;;  %s224_s22 = smov 48   ;;  %v178_v17 = vld [vmem:[%s325_s0 + $0x7] sm:$0x1]  }
   0x9   :  { %v179_v18 = vld [vmem:[%s325_s0 + $0x6] sm:$0x1]   ;;  %s225_s27 = smov 42   ;;  %s226_s28 = smov 36   ;;  %v180_v19 = vld [vmem:[%s325_s0 + $0x5] sm:$0x1]  }
   0xa   :  { %44 = vrot.lane.b32.xlu1 %v169_v7, %s216_s25  ;;  %v181_v20 = vld [vmem:[%s325_s0 + $0x4] sm:$0x1]   ;;  %s228_s5 = smov 24   ;;  %v182_v21 = vld [vmem:[%s325_s0 + $0x3] sm:$0x1]   ;;  %s230_s11 = smov 12  }
   0xb   :  { %v183_v22 = vld [vmem:[%s325_s0 + $0x2] sm:$0x1]   ;;  %v184_v23 = vld [vmem:[%s325_s0 + $0x17] sm:$0x1]   ;;  %v185_v24 = vld [vmem:[%s325_s0 + $0x1] sm:$0x1]  }
   0xc   :  { %38 = vrot.lane.b32.xlu0 %v168_v6, %s215_s24  ;;  %s232_s17 = smov 6   ;;  %v186_v25 = vld [vmem:[%s325_s0 + $0x16] sm:$0x1]   ;;  %s233_s0 = smov 4   ;;  %vm22_vm4 = vcmask 1032128   ;;  %vm28_vm5 = vcmask 982928  }
   0xd   :  { %vm34_vm6 = vcmask 933728   ;;  %vm40_vm7 = vcmask 884528   ;;  %vm46_vm8 = vcmask 835328   ;;  %vm52_vm9 = vcmask 786128  }
   0xe   :  { %56 = vrot.lane.b32.xlu1 %v171_v9, %s218_s4  ;;  %s227_s4 = smov 30   ;;  %vm58_vm10 = vcmask 736928   ;;  %vm64_vm11 = vcmask 687728   ;;  %vm70_vm12 = vcmask 638528   ;;  %vm76_vm13 = vcmask 589328  }
   0xf   :  { %vm82_vm14 = vcmask 540128   ;;  %vm88_vm15 = vcmask 490928   ;;  %vm94_vm0 = vcmask 441728   ;;  %vm100_vm1 = vcmask 392528  }
  0x10   :  { %50 = vrot.lane.b32.xlu0 %v170_v8, %s217_s3 }
  0x12   :  { %68 = vrot.lane.b32.xlu1 %v173_v12, %s220_s10  ;;  %s229_s10 = smov 18  }
  0x14   :  { %62 = vrot.lane.b32.xlu0 %v172_v11, %s219_s9 }
  0x16   :  { %80 = vrot.lane.b32.xlu1 %v175_v14, %s222_s16  ;;  %s231_s16 = smov 10  }
  0x18   :  { %74 = vrot.lane.b32.xlu0 %v174_v13, %s221_s15 }
  0x1a   :  { %92 = vrot.lane.b32.xlu1 %v177_v16, %s224_s22 }
  0x1c   :  { %86 = vrot.lane.b32.xlu0 %v176_v15, %s223_s21 }
  0x1e   :  { %104 = vrot.lane.b32.xlu1 %v179_v18, %s226_s28 }
  0x20   :  { %98 = vrot.lane.b32.xlu0 %v178_v17, %s225_s27 }
  0x22   :  { %116 = vrot.lane.b32.xlu1 %v181_v20, %s228_s5 }
  0x24   :  { %110 = vrot.lane.b32.xlu0 %v180_v19, %s227_s4 }
  0x26   :  { %128 = vrot.lane.b32.xlu1 %v183_v22, %s230_s11 }
  0x28   :  { %122 = vrot.lane.b32.xlu0 %v182_v21, %s229_s10 }
  0x2a   :  { %141 = vrot.lane.b32.xlu1 %v185_v24, %s232_s17 }
  0x2c   :  { %134 = vrot.lane.b32.xlu0 %v184_v23, %s231_s16 }
  0x30   :  { %147 = vrot.lane.b32.xlu0 %v186_v25, %s233_s0 }
  0x74   :  { %v27_v27 = vpop.permute.xlu1 %26  }
  0x76   :  { %v12_v26 = vpop.permute.xlu0 %11  }
  0x77   :  { %15 = vst.msk [vmem:[#allocation0 + $0x8] sm:$0x1] %vm13_vm2, %v12_v26   ;;  %vm106_vm2 = vcmask 343328  }
  0x78   :  { %17 = vst.msk [vmem:[#allocation0] sm:$0x1] %vm16_vm3, %v12_v26   ;;  %v33_v29 = vpop.permute.xlu1 %32   ;;  %vm112_vm3 = vcmask 294128  }
  0x7a   :  { %v21_v28 = vpop.permute.xlu0 %20  }
  0x7b   :  { %23 = vst.msk [vmem:[#allocation0] sm:$0x1] %vm22_vm4, %v21_v28   ;;  %vm118_vm4 = vcmask 244928  }
  0x7c   :  { %29 = vst.msk [vmem:[#allocation0] sm:$0x1] %vm28_vm5, %v27_v27   ;;  %v45_v31 = vpop.permute.xlu1 %44   ;;  %vm124_vm5 = vcmask 195728  }
  0x7d   :  { %35 = vst.msk [vmem:[#allocation0] sm:$0x1] %vm34_vm6, %v33_v29   ;;  %vm130_vm6 = vcmask 146528  }
  0x7e   :  { %v39_v30 = vpop.permute.xlu0 %38  }
  0x7f   :  { %41 = vst.msk [vmem:[#allocation0] sm:$0x1] %vm40_vm7, %v39_v30   ;;  %vm136_vm7 = vcmask 130128  }
  0x80   :  { %47 = vst.msk [vmem:[#allocation0] sm:$0x1] %vm46_vm8, %v45_v31   ;;  %v57_v33 = vpop.permute.xlu1 %56   ;;  %vm143_vm8 = vcmask 97328  }
  0x82   :  { %v51_v32 = vpop.permute.xlu0 %50  }
  0x83   :  { %53 = vst.msk [vmem:[#allocation0] sm:$0x1] %vm52_vm9, %v51_v32   ;;  %vm149_vm9 = vcmask 80928  }
  0x84   :  { %59 = vst.msk [vmem:[#allocation0] sm:$0x1] %vm58_vm10, %v57_v33   ;;  %v69_v35 = vpop.permute.xlu1 %68  }
  0x86   :  { %v63_v34 = vpop.permute.xlu0 %62  }
  0x87   :  { %65 = vst.msk [vmem:[#allocation0] sm:$0x1] %vm64_vm11, %v63_v34  }
  0x88   :  { %71 = vst.msk [vmem:[#allocation0] sm:$0x1] %vm70_vm12, %v69_v35   ;;  %v81_v37 = vpop.permute.xlu1 %80  }
  0x8a   :  { %v75_v36 = vpop.permute.xlu0 %74  }
  0x8b   :  { %77 = vst.msk [vmem:[#allocation0] sm:$0x1] %vm76_vm13, %v75_v36  }
  0x8c   :  { %83 = vst.msk [vmem:[#allocation0] sm:$0x1] %vm82_vm14, %v81_v37   ;;  %v93_v39 = vpop.permute.xlu1 %92  }
  0x8e   :  { %v87_v38 = vpop.permute.xlu0 %86  }
  0x8f   :  { %89 = vst.msk [vmem:[#allocation0] sm:$0x1] %vm88_vm15, %v87_v38  }
  0x90   :  { %95 = vst.msk [vmem:[#allocation0] sm:$0x1] %vm94_vm0, %v93_v39   ;;  %v105_v41 = vpop.permute.xlu1 %104  }
  0x92   :  { %v99_v40 = vpop.permute.xlu0 %98  }
  0x93   :  { %101 = vst.msk [vmem:[#allocation0] sm:$0x1] %vm100_vm1, %v99_v40  }
  0x94   :  { %107 = vst.msk [vmem:[#allocation0] sm:$0x1] %vm106_vm2, %v105_v41   ;;  %v117_v43 = vpop.permute.xlu1 %116  }
  0x96   :  { %v111_v42 = vpop.permute.xlu0 %110  }
  0x97   :  { %113 = vst.msk [vmem:[#allocation0] sm:$0x1] %vm112_vm3, %v111_v42  }
  0x98   :  { %119 = vst.msk [vmem:[#allocation0] sm:$0x1] %vm118_vm4, %v117_v43   ;;  %v129_v45 = vpop.permute.xlu1 %128  }
  0x9a   :  { %v123_v44 = vpop.permute.xlu0 %122  }
  0x9b   :  { %125 = vst.msk [vmem:[#allocation0] sm:$0x1] %vm124_vm5, %v123_v44  }
  0x9c   :  { %131 = vst.msk [vmem:[#allocation0] sm:$0x1] %vm130_vm6, %v129_v45   ;;  %v142_v47 = vpop.permute.xlu1 %141  }
  0x9d   :  { %144 = vst.msk [vmem:[#allocation0] sm:$0x1] %vm143_vm8, %v142_v47  }
  0x9e   :  { %v135_v46 = vpop.permute.xlu0 %134  }
  0x9f   :  { %138 = vst.msk [vmem:[#allocation0 + $0x8] sm:$0x1] %vm136_vm7, %v135_v46  }
  0xa2   :  { %v148_v48 = vpop.permute.xlu0 %147  }
  0xa3   :  { %151 = vst.msk [vmem:[#allocation0 + $0x8] sm:$0x1] %vm149_vm9, %v148_v48  }
  0xa4   :  { %v155_v49 = vld [vmem:[#allocation0] sm:$0x1] }
  0xa5   :  { %157 = vst [vmem:[%s326_s1] sm:$0x1] %v155_v49 }
  0xaa   :  { %v159_v50 = vld [vmem:[#allocation0 + $0x8] sm:$0x1] }
  0xab   :  { %187 = vst [vmem:[%s326_s1 + $0x1] sm:$0x1] %v159_v50 }

// kernel: tile.18
= control target key start
LH: loop header
LB: loop body
LE: loop exit
PB: predicated region body
PF: predicated region fallthrough
CT: control target
= control target key end

     0   :  { %s22_s0 = inlined_call_operand.vmem [shape: f32[16], index: 0, kind: input, shape index: {}]   ;;  %s23_s1 = inlined_call_operand.vmem [shape: f32[8,16], index: 1, kind: output, shape index: {}]  }
   0x1   :  { %v4_v0 = vld [vmem:[%s22_s0] ss:$0 sm:$0xff] }
   0x2   :  { %5 = vst [vmem:[%s23_s1] sm:$0xff] %v4_v0 }

// kernel: tile.19
= control target key start
LH: loop header
LB: loop body
LE: loop exit
PB: predicated region body
PF: predicated region fallthrough
CT: control target
= control target key end

     0   :  { %s67_s10 = smov 112   ;;  %s68_s11 = smov 80   ;;  %vm3_vm0 = vcmask 130048   ;;  %vm9_vm1 = vcmask 1048448   ;;  %vm15_vm2 = vcmask 917248   ;;  %vm21_vm3 = vcmask 786048   ;;  %s111_s0 = inlined_call_operand.vmem [shape: f32[8,16], index: 0, kind: input, shape index: {}]   ;;  %s112_s1 = inlined_call_operand.vmem [shape: f32[1,128], index: 1, kind: output, shape index: {}]  }
   0x1   :  { %v53_v0 = vld [vmem:[%s111_s0 + $0x7] sm:$0x1]   ;;  %v55_v1 = vld [vmem:[%s111_s0 + $0x5] sm:$0x1]   ;;  %v54_v2 = vld [vmem:[%s111_s0 + $0x6] sm:$0x1]  }
   0x2   :  { %7 = vrot.lane.b32.xlu0 %v53_v0, %s67_s10  ;;  %19 = vrot.lane.b32.xlu1 %v55_v1, %s68_s11  ;;  %v56_v3 = vld [vmem:[%s111_s0 + $0x4] sm:$0x1]   ;;  %v2_v4 = vld [vmem:[%s111_s0] sm:$0x1]   ;;  %s69_s18 = smov 96   ;;  %s70_s19 = smov 64  }
   0x3   :  { %4 = vst.msk [vmem:[#allocation0] sm:$0x1] %vm3_vm0, %v2_v4   ;;  %v57_v5 = vld [vmem:[%s111_s0 + $0x3] sm:$0x1]   ;;  %v58_v6 = vld [vmem:[%s111_s0 + $0x2] sm:$0x1]  }
   0x4   :  { %s71_s24 = smov 48   ;;  %s72_s25 = smov 32   ;;  %v59_v7 = vld [vmem:[%s111_s0 + $0x1] sm:$0x1]   ;;  %vm27_vm4 = vcmask 654848   ;;  %vm33_vm5 = vcmask 523648  }
   0x5   :  { %s73_s0 = smov 16   ;;  %vm39_vm6 = vcmask 392448   ;;  %vm45_vm7 = vcmask 261248  }
   0x6   :  { %13 = vrot.lane.b32.xlu0 %v54_v2, %s69_s18  ;;  %25 = vrot.lane.b32.xlu1 %v56_v3, %s70_s19 }
   0xa   :  { %31 = vrot.lane.b32.xlu0 %v57_v5, %s71_s24  ;;  %37 = vrot.lane.b32.xlu1 %v58_v6, %s72_s25 }
   0xe   :  { %43 = vrot.lane.b32.xlu0 %v59_v7, %s73_s0 }
  0x74   :  { %v8_v8 = vpop.permute.xlu0 %7   ;;  %v20_v9 = vpop.permute.xlu1 %19  }
  0x75   :  { %10 = vst.msk [vmem:[#allocation0] sm:$0x1] %vm9_vm1, %v8_v8  }
  0x78   :  { %v14_v10 = vpop.permute.xlu0 %13   ;;  %v26_v11 = vpop.permute.xlu1 %25  }
  0x79   :  { %16 = vst.msk [vmem:[#allocation0] sm:$0x1] %vm15_vm2, %v14_v10  }
  0x7a   :  { %22 = vst.msk [vmem:[#allocation0] sm:$0x1] %vm21_vm3, %v20_v9  }
  0x7b   :  { %28 = vst.msk [vmem:[#allocation0] sm:$0x1] %vm27_vm4, %v26_v11  }
  0x7c   :  { %v32_v12 = vpop.permute.xlu0 %31   ;;  %v38_v13 = vpop.permute.xlu1 %37  }
  0x7d   :  { %34 = vst.msk [vmem:[#allocation0] sm:$0x1] %vm33_vm5, %v32_v12  }
  0x7e   :  { %40 = vst.msk [vmem:[#allocation0] sm:$0x1] %vm39_vm6, %v38_v13  }
  0x80   :  { %v44_v14 = vpop.permute.xlu0 %43  }
  0x81   :  { %46 = vst.msk [vmem:[#allocation0] sm:$0x1] %vm45_vm7, %v44_v14  }
  0x88   :  { %v50_v15 = vld [vmem:[#allocation0] sm:$0x1] }
  0x89   :  { %52 = vst [vmem:[%s112_s1] sm:$0x1] %v50_v15 }

// kernel: net_forward.1
= control target key start
LH: loop header
LB: loop body
LE: loop exit
PB: predicated region body
PF: predicated region fallthrough
CT: control target
= control target key end

     0   :  { %s7139_s0 = inlined_call_operand.vmem [shape: f32[56,84], index: 0, kind: input, shape index: {}]   ;;  %s7140_s1 = inlined_call_operand.vmem [shape: f32[5,48,56], index: 1, kind: input, shape index: {}]   ;;  %s7141_s2 = inlined_call_operand.vmem [shape: f32[5,84,144], index: 2, kind: input, shape index: {}]   ;;  %s7142_s3 = inlined_call_operand.vmem [shape: f32[1,144], index: 3, kind: input, shape index: {}]   ;;  %s7143_s4 = inlined_call_operand.vmem [shape: f32[2,24,48], index: 4, kind: input, shape index: {}]   ;;  %s7144_s5 = inlined_call_operand.vmem [shape: f32[2,144,72], index: 5, kind: input, shape index: {}]   ;;  %s7145_s6 = inlined_call_operand.vmem [shape: f32[5,16,24], index: 6, kind: input, shape index: {}]   ;;  %s7146_s7 = inlined_call_operand.vmem [shape: f32[5,72,128], index: 7, kind: input, shape index: {}]   ;;  %s7147_s8 = inlined_call_operand.vmem [shape: f32[1,128], index: 8, kind: input, shape index: {}]   ;;  %s7148_s9 = inlined_call_operand.vmem [shape: f32[2,8,16], index: 9, kind: input, shape index: {}]   ;;  %s7149_s10 = inlined_call_operand.vmem [shape: f32[2,128,64], index: 10, kind: input, shape index: {}]   ;;  %s7150_s11 = inlined_call_operand.vmem [shape: f32[4,2,8], index: 11, kind: input, shape index: {}]   ;;  %s7151_s12 = inlined_call_operand.vmem [shape: f32[4,64,120], index: 12, kind: input, shape index: {}]   ;;  %s7152_s13 = inlined_call_operand.vmem [shape: f32[1,120], index: 13, kind: input, shape index: {}]   ;;  %s7153_s14 = inlined_call_operand.vmem [shape: f32[120,84], index: 14, kind: input, shape index: {}]   ;;  %s7154_s15 = inlined_call_operand.vmem [shape: f32[1,84], index: 15, kind: input, shape index: {}]   ;;  %s7155_s16 = inlined_call_operand.vmem [shape: f32[84,10], index: 16, kind: input, shape index: {}]   ;;  %s7156_s17 = inlined_call_operand.vmem [shape: f32[1,10], index: 17, kind: input, shape index: {}]   ;;  %s7157_s18 = inlined_call_operand.hbm [shape: f32[2,10], index: 18, kind: output, shape index: {}]  }
   0x1   :  { %7161 = sst [smem:[#allocation5_spill]] %s7139_s0 }
   0x2   :  { %7162 = sst [smem:[#allocation6_spill]] %s7140_s1 }
   0x3   :  { %7163 = sst [smem:[#allocation7_spill]] %s7141_s2 }
   0x4   :  { %s7164_s29 = sld [smem:[#allocation5_spill]]  ;;  %vm73_vm0 = vcmask 457728   ;;  %s7165_s27 = sld [smem:[#allocation6_spill]] }
   0x5   :  { %s7166_s21 = sld [smem:[#allocation7_spill]] }
   0xa   :  { %v60_v0 = vld [vmem:[%s7164_s29] sm:$0xff]  ;;  %v61_v1 = vld [vmem:[%s7164_s29 + $0x8] sm:$0xff]  ;;  %v62_v2 = vld [vmem:[%s7164_s29 + $0x10] sm:$0xff] }
   0xb   :  { %v5718_v3 = vpack.c.bf16 %v61_v1, %v60_v0  ;;  %v63_v4 = vld [vmem:[%s7164_s29 + $0x18] sm:$0xff]  ;;  %v64_v6 = vld [vmem:[%s7164_s29 + $0x20] sm:$0xff]  ;;  %v65_v7 = vld [vmem:[%s7164_s29 + $0x28] sm:$0xff] }
   0xc   :  { %v5723_v5 = vpack.c.bf16 %v63_v4, %v62_v2  ;;  %v3956_v8 = vld [vmem:[%s7165_s27 + $0x30] sm:$0xff]  ;;  %v67_v9 = vld [vmem:[%s7165_s27] sm:$0xff]  ;;  %v5742_v10 = vpack.c.bf16 %v65_v7, %v64_v6  ;;  %v3969_v12 = vld [vmem:[%s7166_s21 + $0xb8] sm:$0xff] }
   0xd   :  { %5063 = vmatprep.subr.bf16.mxu1 %v5718_v3  ;;  %4584 = vmatprep.mubr.msk.f32.mxu1 %vm73_vm0, %v3956_v8  ;;  %v5753_v11 = vld [vmem:[%s7164_s29 + $0x30] sm:$0xff]  ;;  %v3971_v13 = vld [vmem:[%s7166_s21 + $0xc8] sm:$0xff]  ;;  %v3957_v14 = vld [vmem:[%s7165_s27 + $0x38] sm:$0xff] }
   0xe   :  { %5065 = vmatpush3.bf16.msra.mxu1 %v5718_v3  ;;  %5051 = vmatprep.subr.bf16.mxu0 %v5718_v3  ;;  %v3958_v15 = vld [vmem:[%s7165_s27 + $0x40] sm:$0xff]  ;;  %v68_v16 = vld [vmem:[%s7165_s27 + $0x8] sm:$0xff]  ;;  %v69_v17 = vld [vmem:[%s7165_s27 + $0x10] sm:$0xff]  ;;  %v5074_v18 = vpack.c.bf16 %v3971_v13, %v3969_v12 }
   0xf   :  { %5067 = vmatprep.subr.bf16.mxu1 %v5723_v5  ;;  %5053 = vmatpush3.bf16.msra.mxu0 %v5718_v3  ;;  %v3968_v19 = vld [vmem:[%s7166_s21 + $0xb0] sm:$0xff]  ;;  %v3970_v20 = vld [vmem:[%s7166_s21 + $0xc0] sm:$0xff]  ;;  %v3973_v21 = vld [vmem:[%s7166_s21 + $0xd8] sm:$0xff] }
  0x10   :  { %5055 = vmatprep.subr.bf16.mxu0 %v5723_v5  ;;  %4561 = vmatprep.mubr.msk.f32.mxu0 %vm73_vm0, %v67_v9  ;;  %v3975_v22 = vld [vmem:[%s7166_s21 + $0xe8] sm:$0xff]  ;;  %v3960_v24 = vld [vmem:[%s7165_s27 + $0x50] sm:$0xff]  ;;  %v70_v25 = vld [vmem:[%s7165_s27 + $0x18] sm:$0xff]  ;;  %v5076_v26 = vpack.c.bf16 %v3970_v20, %v3968_v19 }
  0x11   :  { %v3959_v23 = vld [vmem:[%s7165_s27 + $0x48] sm:$0xff] }
  0x12   :  { %5069 = vmatpush3.bf16.msra.mxu1 %v5723_v5 }
  0x13   :  { %5071 = vmatprep.subr.bf16.mxu1 %v5742_v10  ;;  %5057 = vmatpush3.bf16.msra.mxu0 %v5723_v5 }
  0x14   :  { %5059 = vmatprep.subr.bf16.mxu0 %v5742_v10 }
  0x16   :  { %5073 = vmatpush3.bf16.msra.mxu1 %v5742_v10 }
  0x17   :  { %4582 = vmatprep.subr.mxu1 %v5753_v11  ;;  %5061 = vmatpush3.bf16.msra.mxu0 %v5742_v10 }
  0x18   :  { %4559 = vmatprep.subr.mxu0 %v5753_v11 }
  0x1a   :  { %4583 = vmatpush3.msra.mxu1 %v5753_v11 }
  0x1b   :  { %4585 = vmatmul.mubr.msk.f32.vlgmr.msra.gmra.mrb[0].mxu1 %vm73_vm0, %v3957_v14  ;;  %4560 = vmatpush3.msra.mxu0 %v5753_v11 }
  0x1c   :  { %4587 = vmatprep.mubr.msk.f32.mxu1 %vm73_vm0, %v3958_v15  ;;  %4562 = vmatmul.mubr.msk.f32.vlgmr.msra.gmra.mrb[0].mxu0 %vm73_vm0, %v68_v16 }
  0x1d   :  { %4564 = vmatprep.mubr.msk.f32.mxu0 %vm73_vm0, %v69_v17  ;;  %5115 = vmatprep.subr.bf16.mxu1 %v5718_v3 }
  0x1e   :  { %23 = vsyncpa [#allocation3], 0  ;;  %5117 = vmatpush3.bf16.msra.mxu1 %v5718_v3  ;;  %v71_v27 = vld [vmem:[%s7165_s27 + $0x20] sm:$0xff]  ;;  %5075 = vmatprep.subr.bf16.mxu0 %v5074_v18  ;;  %v5078_v28 = vpack.c.bf16 %v3975_v22, %v3973_v21  ;;  %v3972_v29 = vld [vmem:[%s7166_s21 + $0xd0] sm:$0xff]  ;;  %vm371_vm1 = vcmask 1043456   ;;  %v5610_v8 = vmov 0.0  }
  0x1f   :  { %v3974_v30 = vld [vmem:[%s7166_s21 + $0xe0] sm:$0xff]  ;;  %4588 = vmatmul.mubr.msk.f32.gmra.mrb[2].mxu1 %vm73_vm0, %v3959_v23  ;;  %5119 = vmatprep.subr.bf16.mxu1 %v5723_v5  ;;  %v3977_v31 = vld [vmem:[%s7166_s21 + $0xf8] sm:$0xff]  ;;  %v3979_v32 = vld [vmem:[%s7166_s21 + $0x108] sm:$0xff]  ;;  %vm352_vm2 = vcmask 687104   ;;  %vm1483_vm3 = vcmask 392192   ;;  %vm1696_vm4 = vcmask 130048  }
  0x20   :  { %4590 = vmatprep.mubr.msk.f32.mxu1 %vm73_vm0, %v3960_v24  ;;  %v3961_v33 = vld [vmem:[%s7165_s27 + $0x58] sm:$0xff]  ;;  %4565 = vmatmul.mubr.msk.f32.gmra.mrb[2].mxu0 %vm73_vm0, %v70_v25  ;;  %v72_v34 = vld [vmem:[%s7165_s27 + $0x28] sm:$0xff]  ;;  %v4006_v35 = vld [vmem:[%s7165_s27 + $0x60] sm:$0xff]  ;;  %v5080_v36 = vpack.c.bf16 %v3974_v30, %v3972_v29  ;;  %v5082_v37 = vpack.c.bf16 %v3979_v32, %v3977_v31  ;;  %vm1890_vm5 = vcmask 195584   ;;  %vm2075_vm6 = vcmask 588800  }
  0x21   :  { %4567 = vmatprep.mubr.msk.f32.mxu0 %vm73_vm0, %v71_v27  ;;  %5077 = vmatpush1.bf16.msra.mxu0 %v5076_v26  ;;  %v3976_v38 = vld [vmem:[%s7166_s21 + $0xf0] sm:$0xff]  ;;  %v3978_v39 = vld [vmem:[%s7166_s21 + $0x100] sm:$0xff]  ;;  %v3981_v40 = vld [vmem:[%s7166_s21 + $0x118] sm:$0xff]  ;;  %vm5612_vm7 = vmmov 0   ;;  %vm3105_vm8 = vcmask 64512   ;;  %vm3271_vm9 = vcmask 523264  }
  0x22   :  { %5121 = vmatpush3.bf16.msra.mxu1 %v5723_v5  ;;  %5079 = vmatprep.subr.bf16.mxu0 %v5078_v28  ;;  %v3983_v41 = vld [vmem:[%s7166_s21 + $0x128] sm:$0xff]  ;;  %v5084_v42 = vpack.c.bf16 %v3978_v39, %v3976_v38  ;;  %v3980_v44 = vld [vmem:[%s7166_s21 + $0x110] sm:$0xff]  ;;  %v3982_v45 = vld [vmem:[%s7166_s21 + $0x120] sm:$0xff]  ;;  %vm3765_vm10 = vcmask 982016   ;;  %vm3934_vm11 = vcmask 74752  }
  0x23   :  { %4591 = vmatmul.mubr.msk.f32.gmra.mrb[4].mxu1 %vm73_vm0, %v3961_v33  ;;  %5123 = vmatprep.subr.bf16.mxu1 %v5742_v10  ;;  %v5086_v43 = vpack.c.bf16 %v3983_v41, %v3981_v40  ;;  %v3985_v46 = vld [vmem:[%s7166_s21 + $0x138] sm:$0xff]  ;;  %v3987_v47 = vld [vmem:[%s7166_s21 + $0x148] sm:$0xff]  ;;  %v4008_v49 = vld [vmem:[%s7165_s27 + $0x70] sm:$0xff]  ;;  %v5088_v50 = vpack.c.bf16 %v3982_v45, %v3980_v44 }
  0x24   :  { %4568 = vmatmul.mubr.msk.f32.gmra.mrb[4].mxu0 %vm73_vm0, %v72_v34  ;;  %4607 = vmatprep.mubr.msk.f32.mxu1 %vm73_vm0, %v4006_v35  ;;  %v4007_v48 = vld [vmem:[%s7165_s27 + $0x68] sm:$0xff]  ;;  %v5090_v51 = vpack.c.bf16 %v3987_v47, %v3985_v46  ;;  %v3984_v52 = vld [vmem:[%s7166_s21 + $0x130] sm:$0xff]  ;;  %v3986_v53 = vld [vmem:[%s7166_s21 + $0x140] sm:$0xff] }
  0x25   :  { %5081 = vmatpush1.bf16.msra.mxu0 %v5080_v36  ;;  %v4009_v54 = vld [vmem:[%s7165_s27 + $0x78] sm:$0xff]  ;;  %v4010_v55 = vld [vmem:[%s7165_s27 + $0x80] sm:$0xff]  ;;  %v5092_v56 = vpack.c.bf16 %v3986_v53, %v3984_v52  ;;  %v4011_v57 = vld [vmem:[%s7165_s27 + $0x88] sm:$0xff]  ;;  %442 = vmatprep.mubr.f32.mxu0 %v5610_v8 }
  0x26   :  { %5125 = vmatpush3.bf16.msra.mxu1 %v5742_v10  ;;  %5083 = vmatprep.subr.bf16.mxu0 %v5082_v37  ;;  %v4048_v58 = vld [vmem:[%s7165_s27 + $0x90] sm:$0xff]  ;;  %v4049_v59 = vld [vmem:[%s7165_s27 + $0x98] sm:$0xff]  ;;  %v4050_v60 = vld [vmem:[%s7165_s27 + $0xa0] sm:$0xff] }
  0x27   :  { %4605 = vmatprep.subr.mxu1 %v5753_v11  ;;  %v4051_v61 = vld [vmem:[%s7165_s27 + $0xa8] sm:$0xff]  ;;  %v4052_v62 = vld [vmem:[%s7165_s27 + $0xb0] sm:$0xff]  ;;  %v4053_v63 = vld [vmem:[%s7165_s27 + $0xb8] sm:$0xff] }
  0x28   :  { %v4090_v0 = vld [vmem:[%s7165_s27 + $0xc0] sm:$0xff]  ;;  %v4091_v1 = vld [vmem:[%s7165_s27 + $0xc8] sm:$0xff]  ;;  %v4092_v2 = vld [vmem:[%s7165_s27 + $0xd0] sm:$0xff] }
  0x29   :  { %5085 = vmatpush1.bf16.msra.mxu0 %v5084_v42  ;;  %v4094_v4 = vld [vmem:[%s7165_s27 + $0xe0] sm:$0xff]  ;;  %v3989_v6 = vld [vmem:[%s7166_s21 + $0x158] sm:$0xf]  ;;  %v3988_v7 = vld [vmem:[%s7166_s21 + $0x150] sm:$0xf] }
  0x2a   :  { %4606 = vmatpush3.msra.mxu1 %v5753_v11  ;;  %5087 = vmatprep.subr.bf16.mxu0 %v5086_v43  ;;  %v188_v9 = vld [vmem:[%s7166_s21 + $0x8] sm:$0xff]  ;;  %v187_v12 = vld [vmem:[%s7166_s21] sm:$0xff]  ;;  %v189_v13 = vld [vmem:[%s7166_s21 + $0x10] sm:$0xff] }
  0x2b   :  { %4608 = vmatmul.mubr.msk.f32.vlgmr.msra.gmra.mrb[6].mxu1 %vm73_vm0, %v4007_v48  ;;  %5147 = vmatprep.subr.bf16.mxu1 %v5718_v3  ;;  %v192_v14 = vld [vmem:[%s7166_s21 + $0x28] sm:$0xff]  ;;  %v194_v15 = vld [vmem:[%s7166_s21 + $0x38] sm:$0xff]  ;;  %v5096_v16 = vpack.c.bf16 %v189_v13, %v187_v12  ;;  %v191_v19 = vld [vmem:[%s7166_s21 + $0x20] sm:$0xff] }
  0x2c   :  { %4610 = vmatprep.mubr.msk.f32.mxu1 %vm73_vm0, %v4008_v49  ;;  %5149 = vmatpush3.bf16.msra.mxu1 %v5718_v3  ;;  %v5098_v18 = vpack.c.bf16 %v194_v15, %v192_v14  ;;  %v193_v20 = vld [vmem:[%s7166_s21 + $0x30] sm:$0xff]  ;;  %v196_v22 = vld [vmem:[%s7166_s21 + $0x48] sm:$0xff]  ;;  %v198_v23 = vld [vmem:[%s7166_s21 + $0x58] sm:$0xff] }
  0x2d   :  { %5151 = vmatprep.subr.bf16.mxu1 %v5723_v5  ;;  %5089 = vmatpush1.bf16.msra.mxu0 %v5088_v50  ;;  %v5100_v26 = vpack.c.bf16 %v193_v20, %v191_v19  ;;  %v5102_v28 = vpack.c.bf16 %v198_v23, %v196_v22  ;;  %v195_v29 = vld [vmem:[%s7166_s21 + $0x40] sm:$0xff]  ;;  %v197_v30 = vld [vmem:[%s7166_s21 + $0x50] sm:$0xff]  ;;  %v200_v32 = vld [vmem:[%s7166_s21 + $0x68] sm:$0xff] }
  0x2e   :  { %5091 = vmatprep.subr.bf16.mxu0 %v5090_v51  ;;  %v202_v33 = vld [vmem:[%s7166_s21 + $0x78] sm:$0xff]  ;;  %v5104_v36 = vpack.c.bf16 %v197_v30, %v195_v29  ;;  %v199_v39 = vld [vmem:[%s7166_s21 + $0x60] sm:$0xff]  ;;  %v201_v40 = vld [vmem:[%s7166_s21 + $0x70] sm:$0xff] }
  0x2f   :  { %4611 = vmatmul.mubr.msk.f32.gmra.mrb[8].mxu1 %vm73_vm0, %v4009_v54  ;;  %v5106_v38 = vpack.c.bf16 %v202_v33, %v200_v32  ;;  %v204_v42 = vld [vmem:[%s7166_s21 + $0x88] sm:$0xff]  ;;  %v206_v43 = vld [vmem:[%s7166_s21 + $0x98] sm:$0xff]  ;;  %v5108_v46 = vpack.c.bf16 %v201_v40, %v199_v39  ;;  %v203_v48 = vld [vmem:[%s7166_s21 + $0x80] sm:$0xff] }
  0x30   :  { %4613 = vmatprep.mubr.msk.f32.mxu1 %vm73_vm0, %v4010_v55  ;;  %5153 = vmatpush3.bf16.msra.mxu1 %v5723_v5  ;;  %v5110_v47 = vpack.c.bf16 %v206_v43, %v204_v42  ;;  %v205_v49 = vld [vmem:[%s7166_s21 + $0x90] sm:$0xff]  ;;  %v208_v52 = vld [vmem:[%s7166_s21 + $0xa8] sm:$0xf]  ;;  %v4021_v54 = vld [vmem:[%s7166_s21 + $0x178] sm:$0xff] }
  0x31   :  { %5155 = vmatprep.subr.bf16.mxu1 %v5742_v10  ;;  %5093 = vmatpush1.bf16.msra.mxu0 %v5092_v56  ;;  %v5112_v50 = vpack.c.bf16 %v205_v49, %v203_v48  ;;  %v4019_v53 = vld [vmem:[%s7166_s21 + $0x168] sm:$0xff]  ;;  %v207_v56 = vld [vmem:[%s7166_s21 + $0xa0] sm:$0xf]  ;;  %v4028_v12 = vld [vmem:[%s7166_s21 + $0x1b0] sm:$0xff] }
  0x32   :  { %3990 = vmatprep.subr.msk.mxu0 %vm371_vm1, %v3989_v6  ;;  %v4029_v6 = vld [vmem:[%s7166_s21 + $0x1b8] sm:$0xff]  ;;  %v4031_v13 = vld [vmem:[%s7166_s21 + $0x1c8] sm:$0xff]  ;;  %v4030_v19 = vld [vmem:[%s7166_s21 + $0x1c0] sm:$0xff] }
  0x33   :  { %4614 = vmatmul.mubr.msk.f32.gmra.mrb[10].mxu1 %vm73_vm0, %v4011_v57  ;;  %v5126_v57 = vpack.c.bf16 %v4021_v54, %v4019_v53  ;;  %v4033_v14 = vld [vmem:[%s7166_s21 + $0x1d8] sm:$0xff]  ;;  %v4032_v20 = vld [vmem:[%s7166_s21 + $0x1d0] sm:$0xff]  ;;  %v4039_v32 = vld [vmem:[%s7166_s21 + $0x208] sm:$0xf] }
  0x34   :  { %5157 = vmatpush3.bf16.msra.mxu1 %v5742_v10  ;;  %4630 = vmatprep.mubr.msk.f32.mxu1 %vm73_vm0, %v4048_v58  ;;  %v4018_v58 = vld [vmem:[%s7166_s21 + $0x160] sm:$0xff]  ;;  %v4037_v22 = vld [vmem:[%s7166_s21 + $0x1f8] sm:$0xff]  ;;  %v4071_v49 = vld [vmem:[%s7166_s21 + $0x268] sm:$0xff] }
  0x35   :  { %4628 = vmatprep.subr.mxu1 %v5753_v11  ;;  %3991 = vmatpush1.msk.msra.mxu0 %vm371_vm1, %v3988_v7  ;;  %v4061_v33 = vld [vmem:[%s7166_s21 + $0x218] sm:$0xff]  ;;  %v4068_v54 = vld [vmem:[%s7166_s21 + $0x250] sm:$0xff] }
  0x36   :  { %v4065_v40 = vld [vmem:[%s7166_s21 + $0x238] sm:$0xff] }
  0x38   :  { %4629 = vmatpush3.msra.mxu1 %v5753_v11 }
  0x39   :  { %4631 = vmatmul.mubr.msk.f32.vlgmr.msra.gmra.mrb[12].mxu1 %vm73_vm0, %v4049_v59  ;;  %5179 = vmatprep.subr.bf16.mxu1 %v5718_v3  ;;  %v4020_v59 = vld [vmem:[%s7166_s21 + $0x170] sm:$0xff] }
  0x3a   :  { %4633 = vmatprep.mubr.msk.f32.mxu1 %vm73_vm0, %v4050_v60  ;;  %5181 = vmatpush3.bf16.msra.mxu1 %v5718_v3  ;;  %v4093_v3 = vld [vmem:[%s7165_s27 + $0xd8] sm:$0xff] }
  0x3b   :  { %5183 = vmatprep.subr.bf16.mxu1 %v5723_v5 }
  0x3d   :  { %4634 = vmatmul.mubr.msk.f32.gmra.mrb[14].mxu1 %vm73_vm0, %v4051_v61  ;;  %v4023_v61 = vld [vmem:[%s7166_s21 + $0x188] sm:$0xff] }
  0x3e   :  { %4636 = vmatprep.mubr.msk.f32.mxu1 %vm73_vm0, %v4052_v62  ;;  %5185 = vmatpush3.bf16.msra.mxu1 %v5723_v5  ;;  %v4095_v5 = vld [vmem:[%s7165_s27 + $0xe8] sm:$0xff]  ;;  %v4025_v62 = vld [vmem:[%s7166_s21 + $0x198] sm:$0xff] }
  0x3f   :  { %5187 = vmatprep.subr.bf16.mxu1 %v5742_v10 }
  0x41   :  { %4637 = vmatmul.mubr.msk.f32.gmra.mrb[16].mxu1 %vm73_vm0, %v4053_v63 }
  0x42   :  { %5189 = vmatpush3.bf16.msra.mxu1 %v5742_v10  ;;  %4653 = vmatprep.mubr.msk.f32.mxu1 %vm73_vm0, %v4090_v0  ;;  %v190_v10 = vld [vmem:[%s7166_s21 + $0x18] sm:$0xff]  ;;  %v5128_v0 = vpack.c.bf16 %v4020_v59, %v4018_v58  ;;  %v4075_v58 = vld [vmem:[%s7166_s21 + $0x288] sm:$0xff] }
  0x43   :  { %4651 = vmatprep.subr.mxu1 %v5753_v11 }
  0x46   :  { %4652 = vmatpush3.msra.mxu1 %v5753_v11  ;;  %v5094_v11 = vpack.c.bf16 %v190_v10, %v188_v9 }
  0x47   :  { %4654 = vmatmul.mubr.msk.f32.vlgmr.msra.gmra.mrb[18].mxu1 %vm73_vm0, %v4091_v1  ;;  %v5130_v1 = vpack.c.bf16 %v4025_v62, %v4023_v61 }
  0x48   :  { %4656 = vmatprep.mubr.msk.f32.mxu1 %vm73_vm0, %v4092_v2  ;;  %5095 = vmatprep.subr.bf16.mxu0 %v5094_v11  ;;  %v4022_v2 = vld [vmem:[%s7166_s21 + $0x180] sm:$0xff] }
  0x49   :  { %v4026_v11 = vld [vmem:[%s7166_s21 + $0x1a0] sm:$0xff] }
  0x4b   :  { %4657 = vmatmul.mubr.msk.f32.gmra.mrb[20].mxu1 %vm73_vm0, %v4093_v3  ;;  %v4024_v3 = vld [vmem:[%s7166_s21 + $0x190] sm:$0xff] }
  0x4c   :  { %4659 = vmatprep.mubr.msk.f32.mxu1 %vm73_vm0, %v4094_v4  ;;  %v5132_v9 = vpack.c.bf16 %v4024_v3, %v4022_v2  ;;  %v4077_v2 = vld [vmem:[%s7166_s21 + $0x298] sm:$0xff] }
  0x4f   :  { %4660 = vmatmul.mubr.msk.f32.gmra.mrb[22].mxu1 %vm73_vm0, %v4095_v5  ;;  %v4027_v5 = vld [vmem:[%s7166_s21 + $0x1a8] sm:$0xff] }
  0x50   :  { %1557 = vmatprep.mubr.f32.mxu1 %v5610_v8  ;;  %v5134_v10 = vpack.c.bf16 %v4029_v6, %v4027_v5  ;;  %v4076_v6 = vld [vmem:[%s7166_s21 + $0x290] sm:$0xff] }
  0xee   :  { %v4586_v17 = vpop.f32.mrb[0].mxu1 }
  0xef   :  { %v300_v21 = vpop.f32.mrb[1].mxu1  ;;  %v5998_v24 = vpop.f32.mrb[0].mxu0 }
  0xf0   :  { %3992 = vmatmul.mubr.msk.f32.vlgmr.msra.gmra.mrb[6].mxu0 %vm352_vm2, %v300_v21  ;;  %v6001_v25 = vpop.f32.mrb[1].mxu0  ;;  %v4035_v21 = vld [vmem:[%s7166_s21 + $0x1e8] sm:$0xff] }
  0xf1   :  { %448 = vmatprep.mubr.f32.mxu0 %v5610_v8  ;;  %5097 = vmatpush1.bf16.msra.mxu0 %v5096_v16  ;;  %v5136_v16 = vpack.c.bf16 %v4028_v12, %v4026_v11  ;;  %v4103_v11 = vld [vmem:[%s7166_s21 + $0x2c8] sm:$0xff]  ;;  %v4105_v12 = vld [vmem:[%s7166_s21 + $0x2d8] sm:$0xff] }
  0xf2   :  { %v4589_v27 = vpop.f32.mrb[2].mxu1  ;;  %5099 = vmatprep.subr.bf16.mxu0 %v5098_v18  ;;  %v5138_v18 = vpack.c.bf16 %v4033_v14, %v4031_v13  ;;  %v5190_v13 = vpack.c.bf16 %v4105_v12, %v4103_v11  ;;  %v4102_v14 = vld [vmem:[%s7166_s21 + $0x2c0] sm:$0xff] }
  0xf3   :  { %v310_v31 = vpop.f32.mrb[3].mxu1  ;;  %v6016_v34 = vpop.f32.mrb[2].mxu0 }
  0xf4   :  { %3993 = vmatmul.mubr.msk.f32.gmra.mrb[8].mxu0 %vm352_vm2, %v4586_v17  ;;  %v6019_v35 = vpop.f32.mrb[3].mxu0 }
  0xf5   :  { %454 = vmatprep.mubr.f32.mxu0 %v5610_v8  ;;  %5101 = vmatpush1.bf16.msra.mxu0 %v5100_v26  ;;  %v5142_v26 = vpack.c.bf16 %v4037_v22, %v4035_v21  ;;  %v4106_v21 = vld [vmem:[%s7166_s21 + $0x2e0] sm:$0xff]  ;;  %v4108_v22 = vld [vmem:[%s7166_s21 + $0x2f0] sm:$0xff] }
  0xf6   :  { %5103 = vmatprep.subr.bf16.mxu0 %v5102_v28  ;;  %v4592_v37 = vpop.f32.mrb[4].mxu1  ;;  %v4036_v28 = vld [vmem:[%s7166_s21 + $0x1f0] sm:$0xff] }
  0xf7   :  { %v320_v41 = vpop.f32.mrb[5].mxu1  ;;  %v6034_v44 = vpop.f32.mrb[4].mxu0 }
  0xf8   :  { %3994 = vmatmul.mubr.msk.f32.gmra.mrb[10].mxu0 %vm352_vm2, %v310_v31  ;;  %v6037_v45 = vpop.f32.mrb[5].mxu0 }
  0xf9   :  { %460 = vmatprep.mubr.f32.mxu0 %v5610_v8  ;;  %5105 = vmatpush1.bf16.msra.mxu0 %v5104_v36 }
  0xfa   :  { %5107 = vmatprep.subr.bf16.mxu0 %v5106_v38  ;;  %v4062_v38 = vld [vmem:[%s7166_s21 + $0x220] sm:$0xff] }
  0xfc   :  { %3995 = vmatmul.mubr.msk.f32.gmra.mrb[12].mxu0 %vm352_vm2, %v4589_v27  ;;  %v4034_v27 = vld [vmem:[%s7166_s21 + $0x1e0] sm:$0xff] }
  0xfd   :  { %466 = vmatprep.mubr.f32.mxu0 %v5610_v8  ;;  %5109 = vmatpush1.bf16.msra.mxu0 %v5108_v46  ;;  %v5144_v30 = vpack.c.bf16 %v4036_v28, %v4034_v27  ;;  %v4064_v46 = vld [vmem:[%s7166_s21 + $0x230] sm:$0xff]  ;;  %v4110_v28 = vld [vmem:[%s7166_s21 + $0x300] sm:$0xff] }
  0xfe   :  { %5111 = vmatprep.subr.bf16.mxu0 %v5110_v47  ;;  %v6048_v51 = vpop.f32.mrb[6].mxu1  ;;  %v4066_v47 = vld [vmem:[%s7166_s21 + $0x240] sm:$0xff] }
  0xff   :  { %v6059_v55 = vpop.f32.mrb[7].mxu1 }
 0x100   :  { %3996 = vmatmul.mubr.msk.f32.gmra.mrb[14].mxu0 %vm352_vm2, %v320_v41  ;;  %v4067_v41 = vld [vmem:[%s7166_s21 + $0x248] sm:$0xff] }
 0x101   :  { %472 = vmatprep.mubr.f32.mxu0 %v5610_v8  ;;  %5113 = vmatpush1.bf16.msra.mxu0 %v5112_v50 }
 0x102   :  { %3998 = vmatprep.subr.msk.mxu0 %vm371_vm1, %v208_v52  ;;  %v6073_v60 = vpop.f32.mrb[8].mxu1  ;;  %v5164_v52 = vpack.c.bf16 %v4066_v47, %v4064_v46 }
 0x103   :  { %v6081_v63 = vpop.f32.mrb[9].mxu1 }
 0x104   :  { %3997 = vmatmul.mubr.msk.f32.gmra.mrb[16].mxu0 %vm352_vm2, %v4592_v37  ;;  %v4060_v37 = vld [vmem:[%s7166_s21 + $0x210] sm:$0xff] }
 0x105   :  { %3999 = vmatpush1.msk.msra.mxu0 %vm371_vm1, %v207_v56  ;;  %567 = vmatprep.mubr.f32.mxu0 %v5610_v8  ;;  %v5160_v43 = vpack.c.bf16 %v4062_v38, %v4060_v37  ;;  %v4070_v56 = vld [vmem:[%s7166_s21 + $0x260] sm:$0xff]  ;;  %v4119_v37 = vld [vmem:[%s7166_s21 + $0x348] sm:$0xff] }
 0x106   :  { %5127 = vmatprep.subr.bf16.mxu0 %v5126_v57  ;;  %v6092_v4 = vpop.f32.mrb[10].mxu1  ;;  %v5168_v61 = vpack.c.bf16 %v4070_v56, %v4068_v54 }
 0x107   :  { %v6100_v7 = vpop.f32.mrb[11].mxu1 }
 0x108   :  { %4000 = vmatmul.mubr.msk.f32.vlgmr.msra.gmra.mrb[6].mxu0 %vm352_vm2, %v6001_v25 }
 0x109   :  { %573 = vmatprep.mubr.f32.mxu0 %v5610_v8  ;;  %5129 = vmatpush1.bf16.msra.mxu0 %v5128_v0  ;;  %v4072_v0 = vld [vmem:[%s7166_s21 + $0x270] sm:$0xff] }
 0x10a   :  { %5131 = vmatprep.subr.bf16.mxu0 %v5130_v1  ;;  %v4074_v1 = vld [vmem:[%s7166_s21 + $0x280] sm:$0xff] }
 0x10b   :  { %v5172_v3 = vpack.c.bf16 %v4074_v1, %v4072_v0 }
 0x10c   :  { %4001 = vmatmul.mubr.msk.f32.gmra.mrb[8].mxu0 %vm352_vm2, %v5998_v24  ;;  %v6119_v15 = vpop.f32.mrb[12].mxu1  ;;  %v5140_v24 = vpack.c.bf16 %v4032_v20, %v4030_v19 }
 0x10d   :  { %579 = vmatprep.mubr.f32.mxu0 %v5610_v8  ;;  %5133 = vmatpush1.bf16.msra.mxu0 %v5132_v9  ;;  %v6122_v17 = vpop.f32.mrb[13].mxu1  ;;  %v4078_v9 = vld [vmem:[%s7166_s21 + $0x2a0] sm:$0xff] }
 0x10e   :  { %5135 = vmatprep.subr.bf16.mxu0 %v5134_v10  ;;  %v4081_v10 = vld [vmem:[%s7166_s21 + $0x2b8] sm:$0xf] }
 0x110   :  { %4002 = vmatmul.mubr.msk.f32.gmra.mrb[10].mxu0 %vm352_vm2, %v6019_v35  ;;  %v6138_v23 = vpop.f32.mrb[14].mxu1  ;;  %v4038_v35 = vld [vmem:[%s7166_s21 + $0x200] sm:$0xf] }
 0x111   :  { %585 = vmatprep.mubr.f32.mxu0 %v5610_v8  ;;  %5137 = vmatpush1.bf16.msra.mxu0 %v5136_v16  ;;  %v6141_v25 = vpop.f32.mrb[15].mxu1  ;;  %v4104_v16 = vld [vmem:[%s7166_s21 + $0x2d0] sm:$0xff] }
 0x112   :  { %5139 = vmatprep.subr.bf16.mxu0 %v5138_v18  ;;  %v4109_v18 = vld [vmem:[%s7166_s21 + $0x2f8] sm:$0xff]  ;;  %v5192_v19 = vpack.c.bf16 %v4104_v16, %v4102_v14 }
 0x114   :  { %4003 = vmatmul.mubr.msk.f32.gmra.mrb[12].mxu0 %vm352_vm2, %v6016_v34  ;;  %v6151_v29 = vpop.f32.mrb[16].mxu1  ;;  %v4063_v34 = vld [vmem:[%s7166_s21 + $0x228] sm:$0xff] }
 0x115   :  { %591 = vmatprep.mubr.f32.mxu0 %v5610_v8  ;;  %5141 = vmatpush1.bf16.msra.mxu0 %v5140_v24  ;;  %v6154_v31 = vpop.f32.mrb[17].mxu1  ;;  %v5158_v36 = vpack.c.bf16 %v4063_v34, %v4061_v33  ;;  %v4111_v24 = vld [vmem:[%s7166_s21 + $0x308] sm:$0xff] }
 0x116   :  { %5143 = vmatprep.subr.bf16.mxu0 %v5142_v26  ;;  %v5196_v26 = vpack.c.bf16 %v4108_v22, %v4106_v21 }
 0x118   :  { %4004 = vmatmul.mubr.msk.f32.gmra.mrb[14].mxu0 %vm352_vm2, %v6037_v45  ;;  %v5162_v45 = vpack.c.bf16 %v4067_v41, %v4065_v40  ;;  %v4118_v41 = vld [vmem:[%s7166_s21 + $0x340] sm:$0xff] }
 0x119   :  { %597 = vmatprep.mubr.f32.mxu0 %v5610_v8  ;;  %5145 = vmatpush1.bf16.msra.mxu0 %v5144_v30  ;;  %v4112_v30 = vld [vmem:[%s7166_s21 + $0x310] sm:$0xff] }
 0x11a   :  { %4040 = vmatprep.subr.msk.mxu0 %vm371_vm1, %v4039_v32  ;;  %v6178_v39 = vpop.f32.mrb[18].mxu1  ;;  %v4115_v32 = vld [vmem:[%s7166_s21 + $0x328] sm:$0xff]  ;;  %v5200_v33 = vpack.c.bf16 %v4112_v30, %v4110_v28 }
 0x11b   :  { %v6186_v42 = vpop.f32.mrb[19].mxu1 }
 0x11c   :  { %4005 = vmatmul.mubr.msk.f32.gmra.mrb[16].mxu0 %vm352_vm2, %v6034_v44  ;;  %v4069_v44 = vld [vmem:[%s7166_s21 + $0x258] sm:$0xff] }
 0x11d   :  { %4041 = vmatpush1.msk.msra.mxu0 %vm371_vm1, %v4038_v35  ;;  %835 = vmatprep.mubr.f32.mxu0 %v5610_v8  ;;  %v5166_v53 = vpack.c.bf16 %v4071_v49, %v4069_v44  ;;  %v4114_v35 = vld [vmem:[%s7166_s21 + $0x320] sm:$0xff] }
 0x11e   :  { %5159 = vmatprep.subr.bf16.mxu0 %v5158_v36  ;;  %v6198_v48 = vpop.f32.mrb[20].mxu1  ;;  %v4116_v36 = vld [vmem:[%s7166_s21 + $0x330] sm:$0xff] }
 0x11f   :  { %v6206_v50 = vpop.f32.mrb[21].mxu1  ;;  %v5204_v38 = vpack.c.bf16 %v4116_v36, %v4114_v35  ;;  %v1678_v35 = vld [vmem:[%s7144_s5] sm:$0xff]  ;;  %v1679_v36 = vld [vmem:[%s7144_s5 + $0x8] sm:$0xff] }
 0x120   :  { %4042 = vmatmul.mubr.msk.f32.vlgmr.msra.gmra.mrb[6].mxu0 %vm352_vm2, %v6059_v55  ;;  %v4073_v55 = vld [vmem:[%s7166_s21 + $0x278] sm:$0xff] }
 0x121   :  { %841 = vmatprep.mubr.f32.mxu0 %v5610_v8  ;;  %5161 = vmatpush1.bf16.msra.mxu0 %v5160_v43  ;;  %v5170_v62 = vpack.c.bf16 %v4075_v58, %v4073_v55  ;;  %v4120_v43 = vld [vmem:[%s7166_s21 + $0x350] sm:$0xff] }
 0x122   :  { %5163 = vmatprep.subr.bf16.mxu0 %v5162_v45  ;;  %v6217_v57 = vpop.f32.mrb[22].mxu1  ;;  %v4123_v45 = vld [vmem:[%s7166_s21 + $0x368] sm:$0xf] }
 0x123   :  { %v6225_v59 = vpop.f32.mrb[23].mxu1 }
 0x124   :  { %4043 = vmatmul.mubr.msk.f32.gmra.mrb[8].mxu0 %vm352_vm2, %v6048_v51  ;;  %v4079_v51 = vld [vmem:[%s7166_s21 + $0x2a8] sm:$0xff] }
 0x125   :  { %847 = vmatprep.mubr.f32.mxu0 %v5610_v8  ;;  %5165 = vmatpush1.bf16.msra.mxu0 %v5164_v52  ;;  %v5174_v5 = vpack.c.bf16 %v4079_v51, %v4077_v2 }
 0x126   :  { %5167 = vmatprep.subr.bf16.mxu0 %v5166_v53 }
 0x128   :  { %4044 = vmatmul.mubr.msk.f32.gmra.mrb[10].mxu0 %vm352_vm2, %v6081_v63  ;;  %v5176_v63 = vpack.c.bf16 %v4078_v9, %v4076_v6 }
 0x129   :  { %853 = vmatprep.mubr.f32.mxu0 %v5610_v8  ;;  %5169 = vmatpush1.bf16.msra.mxu0 %v5168_v61 }
 0x12a   :  { %5171 = vmatprep.subr.bf16.mxu0 %v5170_v62 }
 0x12c   :  { %4045 = vmatmul.mubr.msk.f32.gmra.mrb[12].mxu0 %vm352_vm2, %v6073_v60  ;;  %v4080_v60 = vld [vmem:[%s7166_s21 + $0x2b0] sm:$0xf] }
 0x12d   :  { %859 = vmatprep.mubr.f32.mxu0 %v5610_v8  ;;  %5173 = vmatpush1.bf16.msra.mxu0 %v5172_v3 }
 0x12e   :  { %5175 = vmatprep.subr.bf16.mxu0 %v5174_v5 }
 0x130   :  { %4046 = vmatmul.mubr.msk.f32.gmra.mrb[14].mxu0 %vm352_vm2, %v6100_v7  ;;  %v4107_v7 = vld [vmem:[%s7166_s21 + $0x2e8] sm:$0xff] }
 0x131   :  { %865 = vmatprep.mubr.f32.mxu0 %v5610_v8  ;;  %5177 = vmatpush1.bf16.msra.mxu0 %v5176_v63  ;;  %v5194_v20 = vpack.c.bf16 %v4109_v18, %v4107_v7 }
 0x132   :  { %4082 = vmatprep.subr.msk.mxu0 %vm371_vm1, %v4081_v10 }
 0x134   :  { %4047 = vmatmul.mubr.msk.f32.gmra.mrb[16].mxu0 %vm352_vm2, %v6092_v4  ;;  %v4113_v4 = vld [vmem:[%s7166_s21 + $0x318] sm:$0xff] }
 0x135   :  { %4083 = vmatpush1.msk.msra.mxu0 %vm371_vm1, %v4080_v60  ;;  %1115 = vmatprep.mubr.f32.mxu0 %v5610_v8  ;;  %v5198_v27 = vpack.c.bf16 %v4113_v4, %v4111_v24 }
 0x136   :  { %5191 = vmatprep.subr.bf16.mxu0 %v5190_v13 }
 0x138   :  { %4084 = vmatmul.mubr.msk.f32.vlgmr.msra.gmra.mrb[6].mxu0 %vm352_vm2, %v6122_v17  ;;  %v4117_v17 = vld [vmem:[%s7166_s21 + $0x338] sm:$0xff] }
 0x139   :  { %1121 = vmatprep.mubr.f32.mxu0 %v5610_v8  ;;  %5193 = vmatpush1.bf16.msra.mxu0 %v5192_v19  ;;  %v5202_v34 = vpack.c.bf16 %v4117_v17, %v4115_v32  ;;  %v1480_v17 = vld [vmem:[%s7143_s4] sm:$0xff] }
 0x13a   :  { %5195 = vmatprep.subr.bf16.mxu0 %v5194_v20 }
 0x13c   :  { %4085 = vmatmul.mubr.msk.f32.gmra.mrb[8].mxu0 %vm352_vm2, %v6119_v15  ;;  %v4121_v15 = vld [vmem:[%s7166_s21 + $0x358] sm:$0xff] }
 0x13d   :  { %1127 = vmatprep.mubr.f32.mxu0 %v5610_v8  ;;  %5197 = vmatpush1.bf16.msra.mxu0 %v5196_v26  ;;  %v5206_v40 = vpack.c.bf16 %v4121_v15, %v4119_v37  ;;  %v4135_v37 = vld [vmem:[%s7143_s4 + $0x18] sm:$0xff]  ;;  %v5235_v15 = vpack.c.bf16 %v1679_v36, %v1678_v35  ;;  %v4154_v36 = vld [vmem:[%s7144_s5 + $0xe0] sm:$0xff] }
 0x13e   :  { %5199 = vmatprep.subr.bf16.mxu0 %v5198_v27 }
 0x140   :  { %4086 = vmatmul.mubr.msk.f32.gmra.mrb[10].mxu0 %vm352_vm2, %v6141_v25  ;;  %v5208_v25 = vpack.c.bf16 %v4120_v43, %v4118_v41  ;;  %v1681_v41 = vld [vmem:[%s7144_s5 + $0x18] sm:$0xff]  ;;  %v4136_v43 = vld [vmem:[%s7143_s4 + $0x20] sm:$0xff] }
 0x141   :  { %1133 = vmatprep.mubr.f32.mxu0 %v5610_v8  ;;  %5201 = vmatpush1.bf16.msra.mxu0 %v5200_v33  ;;  %v1481_v33 = vld [vmem:[%s7143_s4 + $0x8] sm:$0xff] }
 0x142   :  { %5203 = vmatprep.subr.bf16.mxu0 %v5202_v34  ;;  %v1482_v34 = vld [vmem:[%s7143_s4 + $0x10] sm:$0xff] }
 0x144   :  { %4087 = vmatmul.mubr.msk.f32.gmra.mrb[12].mxu0 %vm352_vm2, %v6138_v23  ;;  %v4122_v23 = vld [vmem:[%s7166_s21 + $0x360] sm:$0xf] }
 0x145   :  { %1139 = vmatprep.mubr.f32.mxu0 %v5610_v8  ;;  %5205 = vmatpush1.bf16.msra.mxu0 %v5204_v38  ;;  %v5611_v38 = vmov 0.0|0.0  }
 0x146   :  { %5207 = vmatprep.subr.bf16.mxu0 %v5206_v40  ;;  %v1680_v40 = vld [vmem:[%s7144_s5 + $0x10] sm:$0xff] }
 0x148   :  { %4088 = vmatmul.mubr.msk.f32.gmra.mrb[14].mxu0 %vm352_vm2, %v6154_v31 }
 0x149   :  { %1145 = vmatprep.mubr.f32.mxu0 %v5610_v8  ;;  %5209 = vmatpush1.bf16.msra.mxu0 %v5208_v25  ;;  %v5238_v25 = vpack.c.bf16 %v1681_v41, %v1680_v40  ;;  %v4156_v40 = vld [vmem:[%s7144_s5 + $0xf0] sm:$0xff]  ;;  %v4157_v41 = vld [vmem:[%s7144_s5 + $0xf8] sm:$0xff] }
 0x14a   :  { %4124 = vmatprep.subr.msk.mxu0 %vm371_vm1, %v4123_v45  ;;  %v1682_v45 = vld [vmem:[%s7144_s5 + $0x20] sm:$0xff] }
 0x14c   :  { %4089 = vmatmul.mubr.msk.f32.gmra.mrb[16].mxu0 %vm352_vm2, %v6151_v29  ;;  %v1446_v29 = vlaneseq }
 0x14d   :  { %4125 = vmatpush1.msk.msra.mxu0 %vm371_vm1, %v4122_v23  ;;  %1395 = vmatprep.mubr.f32.mxu0 %v5610_v8  ;;  %v1683_v23 = vld [vmem:[%s7144_s5 + $0x28] sm:$0xff] }
 0x14e   :  { %v1447_v31 = vshrl.u32 %v1446_v29, 7  ;;  %v4137_v29 = vld [vmem:[%s7143_s4 + $0x28] sm:$0xff] }
 0x150   :  { %4126 = vmatmul.mubr.msk.f32.vlgmr.msra.gmra.mrb[6].mxu0 %vm352_vm2, %v6186_v42  ;;  %v1444_v42 = vld [vmem:[%s7142_s3] sm:$0x3]  ;;  %v1452_v46 = vsub.s32 1, %v1447_v31 }
 0x151   :  { %1401 = vmatprep.mubr.f32.mxu0 %v5610_v8 }
 0x152   :  { %v1453_v44 = vrot.slane %v1444_v42, %v1452_v46 }
 0x154   :  { %4127 = vmatmul.mubr.msk.f32.gmra.mrb[8].mxu0 %vm352_vm2, %v6178_v39  ;;  %v1448_v39 = vsub.s32 0, %v1447_v31  ;;  %v5241_v31 = vpack.c.bf16 %v1683_v23, %v1682_v45  ;;  %v4159_v45 = vld [vmem:[%s7144_s5 + $0x108] sm:$0xff] }
 0x155   :  { %1407 = vmatprep.mubr.f32.mxu0 %v5610_v8 }
 0x156   :  { %v1449_v47 = vrot.slane %v1444_v42, %v1448_v39  ;;  %v1684_v39 = vld [vmem:[%s7144_s5 + $0x30] sm:$0xff]  ;;  %v1685_v42 = vld [vmem:[%s7144_s5 + $0x38] sm:$0xff] }
 0x157   :  { %v5244_v46 = vpack.c.bf16 %v1685_v42, %v1684_v39  ;;  %v1888_v42 = vld [vmem:[%s7145_s6] sm:$0xff] }
 0x158   :  { %4128 = vmatmul.mubr.msk.f32.gmra.mrb[10].mxu0 %vm352_vm2, %v6206_v50 }
 0x159   :  { %1413 = vmatprep.mubr.f32.mxu0 %v5610_v8 }
 0x15c   :  { %4129 = vmatmul.mubr.msk.f32.gmra.mrb[12].mxu0 %vm352_vm2, %v6198_v48 }
 0x15d   :  { %1419 = vmatprep.mubr.f32.mxu0 %v5610_v8 }
 0x160   :  { %4130 = vmatmul.mubr.msk.f32.gmra.mrb[14].mxu0 %vm352_vm2, %v6225_v59 }
 0x161   :  { %1425 = vmatprep.mubr.f32.mxu0 %v5610_v8 }
 0x164   :  { %4131 = vmatmul.mubr.msk.f32.gmra.mrb[16].mxu0 %vm352_vm2, %v6217_v57 }
 0x165   :  { %4668 = vmatprep.mubr.msk.f32.mxu0 %vm1890_vm5, %v1888_v42  ;;  %v4190_v42 = vld [vmem:[%s7146_s7 + $0xa0] sm:$0xff] }
 0x223   :  { %v1397_v48 = vpop.f32.mrb[6].mxu0 }
 0x224   :  { %v1399_v49 = vpop.f32.mrb[7].mxu0  ;;  %v1456_v50 = vadd.f32 %v1449_v47, %v1397_v48  ;;  %v1687_v48 = vld [vmem:[%s7144_s5 + $0x48] sm:$0xff] }
 0x225   :  { %v1457_v52 = vadd.f32 %v1453_v44, %v1399_v49  ;;  %v1688_v49 = vld [vmem:[%s7144_s5 + $0x50] sm:$0xff] }
 0x226   :  { %v1468_v58 = vmax.f32 %v1456_v50, 0.0  ;;  %v1689_v50 = vld [vmem:[%s7144_s5 + $0x58] sm:$0xff] }
 0x227   :  { %v1403_v53 = vpop.f32.mrb[8].mxu0  ;;  %v1469_v59 = vmax.f32 %v1457_v52, 0.0  ;;  %v5250_v52 = vpack.c.bf16 %v1689_v50, %v1688_v49  ;;  %v4174_v49 = vld [vmem:[%s7146_s7 + $0x60] sm:$0xff] }
 0x228   :  { %v1458_v54 = vadd.f32 %v1449_v47, %v1403_v53  ;;  %v1405_v56 = vpop.f32.mrb[9].mxu0  ;;  %v1690_v53 = vld [vmem:[%s7144_s5 + $0x60] sm:$0xff] }
 0x229   :  { %v1459_v55 = vadd.f32 %v1453_v44, %v1405_v56 }
 0x22a   :  { %v1470_v57 = vmax.f32 %v1458_v54, 0.0  ;;  %v1691_v54 = vld [vmem:[%s7144_s5 + $0x68] sm:$0xff] }
 0x22b   :  { %v1471_v61 = vmax.f32 %v1459_v55, 0.0  ;;  %v1409_v62 = vpop.f32.mrb[10].mxu0  ;;  %v5253_v56 = vpack.c.bf16 %v1691_v54, %v1690_v53  ;;  %v1692_v55 = vld [vmem:[%s7144_s5 + $0x70] sm:$0xff] }
 0x22c   :  { %v5212_v0 = vpack.c.bf16 %v1470_v57, %v1468_v58  ;;  %v1411_v1 = vpop.f32.mrb[11].mxu0  ;;  %v1460_v51 = vadd.f32 %v1449_v47, %v1409_v62  ;;  %v1693_v58 = vld [vmem:[%s7144_s5 + $0x78] sm:$0xff]  ;;  %v4176_v53 = vld [vmem:[%s7146_s7 + $0x70] sm:$0xff] }
 0x22d   :  { %v5210_v2 = vpack.c.bf16 %v1471_v61, %v1469_v59  ;;  %v1461_v3 = vadd.f32 %v1453_v44, %v1411_v1  ;;  %v5256_v57 = vpack.c.bf16 %v1693_v58, %v1692_v55  ;;  %v1694_v59 = vld [vmem:[%s7144_s5 + $0x80] sm:$0xff]  ;;  %v1695_v61 = vld [vmem:[%s7144_s5 + $0x88] sm:$0xff] }
 0x22e   :  { %v1472_v10 = vmax.f32 %v1460_v51, 0.0  ;;  %v5259_v62 = vpack.c.bf16 %v1695_v61, %v1694_v59  ;;  %v4178_v55 = vld [vmem:[%s7146_s7 + $0x80] sm:$0xff] }
 0x22f   :  { %v1415_v5 = vpop.f32.mrb[12].mxu0  ;;  %5211 = vmatprep.subr.bf16.mxu1 %v5210_v2  ;;  %v1473_v12 = vmax.f32 %v1461_v3, 0.0 }
 0x230   :  { %v1462_v6 = vadd.f32 %v1449_v47, %v1415_v5  ;;  %v1417_v9 = vpop.f32.mrb[13].mxu0  ;;  %5213 = vmatpush1.bf16.msra.mxu1 %v5212_v0 }
 0x231   :  { %v1463_v63 = vadd.f32 %v1453_v44, %v1417_v9  ;;  %v4145_v9 = vld [vmem:[%s7144_s5 + $0x98] sm:$0xff] }
 0x232   :  { %v1474_v11 = vmax.f32 %v1462_v6, 0.0  ;;  %v4144_v6 = vld [vmem:[%s7144_s5 + $0x90] sm:$0xff] }
 0x233   :  { %v1475_v60 = vmax.f32 %v1463_v63, 0.0  ;;  %v1421_v13 = vpop.f32.mrb[14].mxu0 }
 0x234   :  { %v5216_v14 = vpack.c.bf16 %v1474_v11, %v1472_v10  ;;  %v1423_v16 = vpop.f32.mrb[15].mxu0  ;;  %v1464_v18 = vadd.f32 %v1449_v47, %v1421_v13  ;;  %v4146_v13 = vld [vmem:[%s7144_s5 + $0xa0] sm:$0xff] }
 0x235   :  { %v5214_v7 = vpack.c.bf16 %v1475_v60, %v1473_v12  ;;  %v1465_v19 = vadd.f32 %v1453_v44, %v1423_v16  ;;  %v5262_v60 = vpack.c.bf16 %v4145_v9, %v4144_v6 }
 0x236   :  { %v1476_v4 = vmax.f32 %v1464_v18, 0.0 }
 0x237   :  { %v1427_v20 = vpop.f32.mrb[16].mxu0  ;;  %5215 = vmatprep.subr.bf16.mxu1 %v5214_v7  ;;  %v1477_v27 = vmax.f32 %v1465_v19, 0.0 }
 0x238   :  { %v1466_v21 = vadd.f32 %v1449_v47, %v1427_v20  ;;  %v1429_v22 = vpop.f32.mrb[17].mxu0  ;;  %5217 = vmatpush1.bf16.msra.mxu1 %v5216_v14  ;;  %v1686_v47 = vld [vmem:[%s7144_s5 + $0x40] sm:$0xff] }
 0x239   :  { %v1467_v24 = vadd.f32 %v1453_v44, %v1429_v22  ;;  %v5247_v44 = vpack.c.bf16 %v1687_v48, %v1686_v47  ;;  %v4149_v22 = vld [vmem:[%s7144_s5 + $0xb8] sm:$0xff]  ;;  %v4172_v47 = vld [vmem:[%s7146_s7 + $0x50] sm:$0xff] }
 0x23a   :  { %v1478_v26 = vmax.f32 %v1466_v21, 0.0  ;;  %v4148_v21 = vld [vmem:[%s7144_s5 + $0xb0] sm:$0xff]  ;;  %v4173_v48 = vld [vmem:[%s7146_s7 + $0x58] sm:$0xff] }
 0x23b   :  { %v1479_v28 = vmax.f32 %v1467_v24, 0.0  ;;  %v5300_v50 = vpack.c.bf16 %v4174_v49, %v4173_v48 }
 0x23c   :  { %v5220_v30 = vpack.c.bf16 %v1478_v26, %v1476_v4 }
 0x23d   :  { %v5218_v32 = vpack.c.bf16 %v1479_v28, %v1477_v27  ;;  %v5268_v28 = vpack.c.bf16 %v4149_v22, %v4148_v21  ;;  %v4215_v21 = vld [vmem:[%s7145_s6 + $0x48] sm:$0xff] }
 0x23e   :  { %v4179_v22 = vld [vmem:[%s7146_s7 + $0x88] sm:$0xff] }
 0x23f   :  { %5219 = vmatprep.subr.bf16.mxu1 %v5218_v32 }
 0x240   :  { %5221 = vmatpush1.bf16.msra.mxu1 %v5220_v30 }
 0x241   :  { %5223 = vmatprep.subr.bf16.mxu1 %v5210_v2 }
 0x243   :  { %4132 = vmatmul.mubr.msk.f32.vlgmr.msra.gmra.mrb[24].mxu1 %vm1483_vm3, %v1480_v17 }
 0x244   :  { %5225 = vmatpush1.bf16.msra.mxu1 %v5212_v0  ;;  %1563 = vmatprep.mubr.f32.mxu1 %v5610_v8 }
 0x245   :  { %5227 = vmatprep.subr.bf16.mxu1 %v5214_v7 }
 0x247   :  { %4133 = vmatmul.mubr.msk.f32.gmra.mrb[26].mxu1 %vm1483_vm3, %v1481_v33  ;;  %v4152_v33 = vld [vmem:[%s7144_s5 + $0xd0] sm:$0xff] }
 0x248   :  { %5229 = vmatpush1.bf16.msra.mxu1 %v5216_v14  ;;  %1569 = vmatprep.mubr.f32.mxu1 %v5610_v8  ;;  %v4147_v14 = vld [vmem:[%s7144_s5 + $0xa8] sm:$0xff] }
 0x249   :  { %5231 = vmatprep.subr.bf16.mxu1 %v5218_v32  ;;  %v5265_v20 = vpack.c.bf16 %v4147_v14, %v4146_v13  ;;  %v4151_v32 = vld [vmem:[%s7144_s5 + $0xc8] sm:$0xff]  ;;  %v4167_v13 = vld [vmem:[%s7145_s6 + $0x10] sm:$0xff]  ;;  %v4168_v14 = vld [vmem:[%s7145_s6 + $0x18] sm:$0xff] }
 0x24b   :  { %4134 = vmatmul.mubr.msk.f32.gmra.mrb[28].mxu1 %vm1483_vm3, %v1482_v34  ;;  %v4153_v34 = vld [vmem:[%s7144_s5 + $0xd8] sm:$0xff] }
 0x24c   :  { %5233 = vmatpush1.bf16.msra.mxu1 %v5220_v30  ;;  %1653 = vmatprep.mubr.f32.mxu1 %v5610_v8  ;;  %v4150_v30 = vld [vmem:[%s7144_s5 + $0xc0] sm:$0xff]  ;;  %v5274_v35 = vpack.c.bf16 %v4153_v34, %v4152_v33 }
 0x24d   :  { %5234 = vmatprep.subr.bf16.mxu1 %v5611_v38  ;;  %v5271_v17 = vpack.c.bf16 %v4151_v32, %v4150_v30  ;;  %v1974_v30 = vld [vmem:[%s7146_s7 + $0x10] sm:$0xff]  ;;  %v1975_v32 = vld [vmem:[%s7146_s7 + $0x18] sm:$0xff] }
 0x24e   :  { %v5316_v34 = vpack.c.bf16 %v1975_v32, %v1974_v30 }
 0x24f   :  { %4138 = vmatmul.mubr.msk.f32.vlgmr.msra.gmra.mrb[30].mxu1 %vm1483_vm3, %v4135_v37  ;;  %v4155_v37 = vld [vmem:[%s7144_s5 + $0xe8] sm:$0xff] }
 0x250   :  { %1659 = vmatprep.mubr.f32.mxu1 %v5610_v8  ;;  %5236 = vmatpush1.bf16.msra.mxu1 %v5235_v15  ;;  %v5277_v15 = vpack.c.bf16 %v4155_v37, %v4154_v36  ;;  %v1977_v36 = vld [vmem:[%s7146_s7 + $0x28] sm:$0xff] }
 0x251   :  { %5237 = vmatprep.subr.bf16.mxu1 %v5611_v38 }
 0x253   :  { %4139 = vmatmul.mubr.msk.f32.gmra.mrb[32].mxu1 %vm1483_vm3, %v4136_v43  ;;  %v5280_v43 = vpack.c.bf16 %v4157_v41, %v4156_v40  ;;  %v1979_v40 = vld [vmem:[%s7146_s7 + $0x38] sm:$0xff] }
 0x254   :  { %1665 = vmatprep.mubr.f32.mxu1 %v5610_v8  ;;  %5239 = vmatpush1.bf16.msra.mxu1 %v5238_v25  ;;  %v4158_v25 = vld [vmem:[%s7144_s5 + $0x100] sm:$0xff] }
 0x255   :  { %5240 = vmatprep.subr.bf16.mxu1 %v5611_v38  ;;  %v5283_v23 = vpack.c.bf16 %v4159_v45, %v4158_v25 }
 0x257   :  { %4140 = vmatmul.mubr.msk.f32.gmra.mrb[34].mxu1 %vm1483_vm3, %v4137_v29  ;;  %v4160_v29 = vld [vmem:[%s7144_s5 + $0x110] sm:$0xff] }
 0x258   :  { %5242 = vmatpush1.bf16.msra.mxu1 %v5241_v31  ;;  %v4161_v31 = vld [vmem:[%s7144_s5 + $0x118] sm:$0xff] }
 0x259   :  { %5243 = vmatprep.subr.bf16.mxu1 %v5611_v38  ;;  %v5286_v39 = vpack.c.bf16 %v4161_v31, %v4160_v29  ;;  %v1980_v29 = vld [vmem:[%s7146_s7 + $0x40] sm:$0xff]  ;;  %v4188_v31 = vld [vmem:[%s7146_s7 + $0x90] sm:$0xff] }
 0x25c   :  { %5245 = vmatpush1.bf16.msra.mxu1 %v5244_v46  ;;  %v4171_v46 = vld [vmem:[%s7146_s7 + $0x48] sm:$0xff] }
 0x25d   :  { %5246 = vmatprep.subr.bf16.mxu1 %v5611_v38 }
 0x260   :  { %5248 = vmatpush1.bf16.msra.mxu1 %v5247_v44  ;;  %v5296_v44 = vpack.c.bf16 %v4172_v47, %v4171_v46  ;;  %v4191_v46 = vld [vmem:[%s7146_s7 + $0xa8] sm:$0xff] }
 0x261   :  { %5249 = vmatprep.subr.bf16.mxu1 %v5611_v38 }
 0x264   :  { %5251 = vmatpush1.bf16.msra.mxu1 %v5250_v52  ;;  %v4175_v52 = vld [vmem:[%s7146_s7 + $0x68] sm:$0xff] }
 0x265   :  { %5252 = vmatprep.subr.bf16.mxu1 %v5611_v38  ;;  %v5304_v54 = vpack.c.bf16 %v4176_v53, %v4175_v52  ;;  %v4193_v52 = vld [vmem:[%s7146_s7 + $0xb8] sm:$0xff] }
 0x268   :  { %5254 = vmatpush1.bf16.msra.mxu1 %v5253_v56  ;;  %v4177_v56 = vld [vmem:[%s7146_s7 + $0x78] sm:$0xff] }
 0x269   :  { %5255 = vmatprep.subr.bf16.mxu1 %v5611_v38  ;;  %v5308_v58 = vpack.c.bf16 %v4178_v55, %v4177_v56  ;;  %v4195_v56 = vld [vmem:[%s7146_s7 + $0xc8] sm:$0xff] }
 0x26c   :  { %5257 = vmatpush1.bf16.msra.mxu1 %v5256_v57 }
 0x26d   :  { %5258 = vmatprep.subr.bf16.mxu1 %v5611_v38 }
 0x270   :  { %5260 = vmatpush1.bf16.msra.mxu1 %v5259_v62 }
 0x271   :  { %5261 = vmatprep.subr.bf16.mxu1 %v5611_v38 }
 0x316   :  { %v1559_v0 = vpop.f32.mrb[24].mxu1 }
 0x317   :  { %v1561_v1 = vpop.f32.mrb[25].mxu1 }
 0x31a   :  { %v1565_v2 = vpop.f32.mrb[26].mxu1 }
 0x31b   :  { %v1567_v51 = vpop.f32.mrb[27].mxu1 }
 0x31e   :  { %v1571_v3 = vpop.f32.mrb[28].mxu1 }
 0x31f   :  { %v1573_v5 = vpop.f32.mrb[29].mxu1 }
 0x322   :  { %v1655_v63 = vpop.f32.mrb[30].mxu1 }
 0x323   :  { %v1672_v10 = vmax.f32 %v1559_v0, %v1655_v63  ;;  %v1657_v11 = vpop.f32.mrb[31].mxu1 }
 0x324   :  { %v1673_v12 = vmax.f32 %v1561_v1, %v1657_v11 }
 0x326   :  { %v1661_v16 = vpop.f32.mrb[32].mxu1  ;;  %4141 = vmatprep.mubr.msk.f32.mxu1 %vm1696_vm4, %v1673_v12 }
 0x327   :  { %v1674_v7 = vmax.f32 %v1565_v2, %v1661_v16  ;;  %v1663_v18 = vpop.f32.mrb[33].mxu1  ;;  %1771 = vmatmul.mubr.f32.vlgmr.msra.gmra.mrb[36].mxu1 %v1672_v10  ;;  %v4184_v16 = vld [vmem:[%s7145_s6 + $0x20] sm:$0xff] }
 0x328   :  { %v1675_v19 = vmax.f32 %v1567_v51, %v1663_v18  ;;  %5263 = vmatpush1.bf16.msra.mxu1 %v5262_v60  ;;  %v1889_v60 = vld [vmem:[%s7145_s6 + $0x8] sm:$0xff]  ;;  %v4199_v18 = vld [vmem:[%s7145_s6 + $0x30] sm:$0xff] }
 0x329   :  { %5264 = vmatprep.subr.bf16.mxu1 %v5611_v38 }
 0x32a   :  { %v1667_v24 = vpop.f32.mrb[34].mxu1  ;;  %4142 = vmatprep.mubr.msk.f32.mxu1 %vm1696_vm4, %v1675_v19 }
 0x32b   :  { %v1676_v4 = vmax.f32 %v1571_v3, %v1667_v24  ;;  %v1669_v26 = vpop.f32.mrb[35].mxu1  ;;  %1776 = vmatmul.mubr.f32.gmra.mrb[38].mxu1 %v1674_v7  ;;  %v1972_v24 = vld [vmem:[%s7146_s7] sm:$0xff] }
 0x32c   :  { %v1677_v27 = vmax.f32 %v1573_v5, %v1669_v26  ;;  %5266 = vmatpush1.bf16.msra.mxu1 %v5265_v20  ;;  %v4214_v20 = vld [vmem:[%s7145_s6 + $0x40] sm:$0xff] }
 0x32d   :  { %5267 = vmatprep.subr.bf16.mxu1 %v5611_v38 }
 0x32e   :  { %4143 = vmatprep.mubr.msk.f32.mxu1 %vm1696_vm4, %v1677_v27 }
 0x32f   :  { %1781 = vmatmul.mubr.f32.gmra.mrb[40].mxu1 %v1676_v4 }
 0x330   :  { %5269 = vmatpush1.bf16.msra.mxu1 %v5268_v28  ;;  %4162 = vmatprep.mubr.msk.f32.mxu1 %vm1696_vm4, %v1673_v12 }
 0x331   :  { %5270 = vmatprep.subr.bf16.mxu1 %v5611_v38 }
 0x334   :  { %5272 = vmatpush1.bf16.msra.mxu1 %v5271_v17 }
 0x335   :  { %5273 = vmatprep.subr.bf16.mxu1 %v5611_v38 }
 0x338   :  { %5275 = vmatpush1.bf16.msra.mxu1 %v5274_v35  ;;  %v1976_v35 = vld [vmem:[%s7146_s7 + $0x20] sm:$0xff] }
 0x339   :  { %5276 = vmatprep.subr.bf16.mxu1 %v5611_v38  ;;  %v5320_v37 = vpack.c.bf16 %v1977_v36, %v1976_v35  ;;  %v2931_v35 = vld [vmem:[%s7149_s10 + $0x8] sm:$0xff] }
 0x33a   :  { %v4231_v36 = vld [vmem:[%s7148_s9 + $0x8] sm:$0xff] }
 0x33c   :  { %5278 = vmatpush1.bf16.msra.mxu1 %v5277_v15  ;;  %v1978_v15 = vld [vmem:[%s7146_s7 + $0x30] sm:$0xff] }
 0x33d   :  { %5279 = vmatprep.subr.bf16.mxu1 %v5611_v38  ;;  %v5324_v25 = vpack.c.bf16 %v1979_v40, %v1978_v15  ;;  %v2932_v15 = vld [vmem:[%s7149_s10 + $0x10] sm:$0xff]  ;;  %v2933_v40 = vld [vmem:[%s7149_s10 + $0x18] sm:$0xff] }
 0x340   :  { %5281 = vmatpush1.bf16.msra.mxu1 %v5280_v43 }
 0x341   :  { %5282 = vmatprep.subr.bf16.mxu1 %v5611_v38 }
 0x344   :  { %5284 = vmatpush1.bf16.msra.mxu1 %v5283_v23 }
 0x345   :  { %5285 = vmatprep.subr.bf16.mxu1 %v5611_v38 }
 0x348   :  { %5287 = vmatpush1.bf16.msra.mxu1 %v5286_v39  ;;  %v4189_v39 = vld [vmem:[%s7146_s7 + $0x98] sm:$0xff] }
 0x349   :  { %5297 = vmatprep.subr.bf16.mxu1 %v5296_v44  ;;  %v5332_v47 = vpack.c.bf16 %v4189_v39, %v4188_v31  ;;  %v2938_v39 = vld [vmem:[%s7149_s10 + $0x40] sm:$0xff] }
 0x34b   :  { %1870 = vmatmul.mubr.f32.vlgmr.msra.gmra.mrb[42].mxu1 %v1672_v10 }
 0x34c   :  { %4163 = vmatprep.mubr.msk.f32.mxu1 %vm1696_vm4, %v1675_v19  ;;  %5299 = vmatpush3.bf16.msra.mxu1 %v5296_v44  ;;  %v4200_v19 = vld [vmem:[%s7145_s6 + $0x38] sm:$0xff]  ;;  %v5336_v44 = vpack.c.bf16 %v4191_v46, %v4190_v42  ;;  %v2939_v42 = vld [vmem:[%s7149_s10 + $0x48] sm:$0xff] }
 0x34d   :  { %5301 = vmatprep.subr.bf16.mxu1 %v5300_v50  ;;  %v5407_v46 = vpack.c.bf16 %v2939_v42, %v2938_v39  ;;  %v3181_v42 = vld [vmem:[%s7151_s12 + $0x10] sm:$0xff] }
 0x34f   :  { %1875 = vmatmul.mubr.f32.gmra.mrb[44].mxu1 %v1674_v7  ;;  %v4185_v7 = vld [vmem:[%s7145_s6 + $0x28] sm:$0xff]  ;;  %s5613_s6 = smov [#allocation2]  }
 0x350   :  { %4164 = vmatprep.mubr.msk.f32.mxu1 %vm1696_vm4, %v1677_v27  ;;  %5303 = vmatpush3.bf16.msra.mxu1 %v5300_v50  ;;  %v4192_v50 = vld [vmem:[%s7146_s7 + $0xb0] sm:$0xff]  ;;  %s3942_s26 = sshll.u32 %s5613_s6, 4  ;;  %s3943_s26 = int_to_ptr.vmem [resolvable:$true] %s3942_s26 }
 0x351   :  { %5305 = vmatprep.subr.bf16.mxu1 %v5304_v54  ;;  %v5340_v53 = vpack.c.bf16 %v4193_v52, %v4192_v50  ;;  %v2943_v50 = vld [vmem:[%s7149_s10 + $0x68] sm:$0xff]  ;;  %p5591_p1 = scmp.lt.s32.totalorder %s3943_s26, %s3943_s26 }
 0x353   :  { %1880 = vmatmul.mubr.f32.gmra.mrb[46].mxu1 %v1676_v4  ;;  %v1973_v4 = vld [vmem:[%s7146_s7 + $0x8] sm:$0xff] }
 0x354   :  { %5307 = vmatpush3.bf16.msra.mxu1 %v5304_v54  ;;  %v5312_v26 = vpack.c.bf16 %v1973_v4, %v1972_v24  ;;  %v4194_v54 = vld [vmem:[%s7146_s7 + $0xc0] sm:$0xff] }
 0x355   :  { %5309 = vmatprep.subr.bf16.mxu1 %v5308_v58  ;;  %v5344_v55 = vpack.c.bf16 %v4195_v56, %v4194_v54  ;;  %v4229_v24 = vld [vmem:[%s7147_s8] ss:$0 sm:$0xff]  ;;  %v2945_v54 = vld [vmem:[%s7149_s10 + $0x78] sm:$0xff] }
 0x358   :  { %5311 = vmatpush3.bf16.msra.mxu1 %v5308_v58  ;;  %v4196_v58 = vld [vmem:[%s7146_s7 + $0xd0] sm:$0xff] }
 0x359   :  { %4696 = vmatprep.subr.mxu1 %v4179_v22 }
 0x35c   :  { %4697 = vmatpush3.msra.mxu1 %v4179_v22  ;;  %v4226_v22 = vld [vmem:[%s7146_s7 + $0x160] sm:$0xff] }
 0x35d   :  { %5313 = vmatprep.subr.bf16.mxu1 %v5312_v26 }
 0x3fa   :  { %v1772_v57 = vpop.f32.mrb[36].mxu1 }
 0x3fb   :  { %v1774_v59 = vpop.f32.mrb[37].mxu1 }
 0x3fc   :  { %v4204_v59 = vld [vmem:[%s7146_s7 + $0xe0] sm:$0xff] }
 0x3fe   :  { %v1777_v61 = vpop.f32.mrb[38].mxu1 }
 0x3ff   :  { %v1779_v62 = vpop.f32.mrb[39].mxu1 }
 0x400   :  { %v4206_v62 = vld [vmem:[%s7146_s7 + $0xf0] sm:$0xff] }
 0x402   :  { %v1782_v0 = vpop.f32.mrb[40].mxu1 }
 0x403   :  { %v1784_v1 = vpop.f32.mrb[41].mxu1 }
 0x41e   :  { %v1871_v2 = vpop.f32.mrb[42].mxu1 }
 0x41f   :  { %v1885_v51 = vmax.f32 %v1772_v57, %v1871_v2  ;;  %v1873_v3 = vpop.f32.mrb[43].mxu1  ;;  %v4203_v57 = vld [vmem:[%s7146_s7 + $0xd8] sm:$0xff] }
 0x420   :  { %v4207_v2 = vld [vmem:[%s7146_s7 + $0xf8] sm:$0xff] }
 0x422   :  { %v1876_v5 = vpop.f32.mrb[44].mxu1 }
 0x423   :  { %v1886_v6 = vmax.f32 %v1777_v61, %v1876_v5  ;;  %v1878_v9 = vpop.f32.mrb[45].mxu1  ;;  %v4205_v61 = vld [vmem:[%s7146_s7 + $0xe8] sm:$0xff] }
 0x424   :  { %v5356_v1 = vpack.c.bf16 %v4206_v62, %v4205_v61  ;;  %v4209_v5 = vld [vmem:[%s7146_s7 + $0x108] sm:$0xff] }
 0x425   :  { %v5288_v63 = vpack.c.bf16 %v1886_v6, %v1885_v51  ;;  %v4208_v51 = vld [vmem:[%s7146_s7 + $0x100] sm:$0xff]  ;;  %v4210_v6 = vld [vmem:[%s7146_s7 + $0x110] sm:$0xff] }
 0x426   :  { %v1881_v10 = vpop.f32.mrb[46].mxu1  ;;  %v5360_v3 = vpack.c.bf16 %v4208_v51, %v4207_v2  ;;  %v5364_v9 = vpack.c.bf16 %v4210_v6, %v4209_v5  ;;  %v4236_v2 = vld [vmem:[%s7149_s10 + $0x98] sm:$0xff]  ;;  %v4237_v5 = vld [vmem:[%s7149_s10 + $0xa0] sm:$0xff]  ;;  %v4238_v6 = vld [vmem:[%s7149_s10 + $0xa8] sm:$0xff] }
 0x427   :  { %v1887_v11 = vmax.f32 %v1782_v0, %v1881_v10  ;;  %v1883_v12 = vpop.f32.mrb[47].mxu1  ;;  %5289 = vmatprep.subr.bf16.mxu0 %v5288_v63  ;;  %v5352_v0 = vpack.c.bf16 %v4204_v59, %v4203_v57  ;;  %v4218_v10 = vld [vmem:[%s7146_s7 + $0x120] sm:$0xff]  ;;  %v4234_v59 = vld [vmem:[%s7149_s10 + $0x88] sm:$0xff] }
 0x428   :  { %5291 = vmatpush3.bf16.msra.mxu0 %v5288_v63  ;;  %v4220_v12 = vld [vmem:[%s7146_s7 + $0x130] sm:$0xff]  ;;  %v4233_v57 = vld [vmem:[%s7149_s10 + $0x80] sm:$0xff] }
 0x429   :  { %4666 = vmatprep.subr.mxu0 %v1887_v11  ;;  %v5419_v62 = vpack.c.bf16 %v4234_v59, %v4233_v57  ;;  %v4266_v57 = vld [vmem:[%s7151_s12 + $0x90] sm:$0xff]  ;;  %v4267_v59 = vld [vmem:[%s7151_s12 + $0x98] sm:$0xff] }
 0x42c   :  { %4667 = vmatpush3.msra.mxu0 %v1887_v11 }
 0x42d   :  { %5293 = vmatprep.subr.bf16.mxu0 %v5288_v63  ;;  %4669 = vmatmul.mubr.msk.f32.vlgmr.msra.gmra.mrb[18].mxu0 %vm1890_vm5, %v1889_v60  ;;  %v4221_v60 = vld [vmem:[%s7146_s7 + $0x138] sm:$0xff] }
 0x42e   :  { %5295 = vmatpush3.bf16.msra.mxu0 %v5288_v63  ;;  %4677 = vmatprep.mubr.msk.f32.mxu0 %vm1890_vm5, %v4167_v13 }
 0x42f   :  { %4675 = vmatprep.subr.mxu0 %v1887_v11 }
 0x432   :  { %4676 = vmatpush3.msra.mxu0 %v1887_v11 }
 0x433   :  { %4678 = vmatmul.mubr.msk.f32.vlgmr.msra.gmra.mrb[20].mxu0 %vm1890_vm5, %v4168_v14  ;;  %5329 = vmatprep.subr.bf16.mxu0 %v5288_v63  ;;  %v5376_v14 = vpack.c.bf16 %v4221_v60, %v4220_v12  ;;  %v4241_v12 = vld [vmem:[%s7149_s10 + $0xc0] sm:$0xff]  ;;  %v4242_v60 = vld [vmem:[%s7149_s10 + $0xc8] sm:$0xff] }
 0x434   :  { %5331 = vmatpush3.bf16.msra.mxu0 %v5288_v63  ;;  %4728 = vmatprep.mubr.msk.f32.mxu0 %vm1890_vm5, %v4184_v16  ;;  %v4222_v16 = vld [vmem:[%s7146_s7 + $0x140] sm:$0xff] }
 0x435   :  { %4726 = vmatprep.subr.mxu0 %v1887_v11 }
 0x438   :  { %4727 = vmatpush3.msra.mxu0 %v1887_v11 }
 0x439   :  { %5349 = vmatprep.subr.bf16.mxu0 %v5288_v63  ;;  %4729 = vmatmul.mubr.msk.f32.vlgmr.msra.gmra.mrb[22].mxu0 %vm1890_vm5, %v4185_v7  ;;  %v4223_v7 = vld [vmem:[%s7146_s7 + $0x148] sm:$0xff] }
 0x43a   :  { %5351 = vmatpush3.bf16.msra.mxu0 %v5288_v63  ;;  %4758 = vmatprep.mubr.msk.f32.mxu0 %vm1890_vm5, %v4199_v18  ;;  %v5380_v18 = vpack.c.bf16 %v4223_v7, %v4222_v16  ;;  %v4244_v16 = vld [vmem:[%s7149_s10 + $0xd8] sm:$0xff] }
 0x43b   :  { %4756 = vmatprep.subr.mxu0 %v1887_v11 }
 0x43e   :  { %4757 = vmatpush3.msra.mxu0 %v1887_v11 }
 0x43f   :  { %5369 = vmatprep.subr.bf16.mxu0 %v5288_v63  ;;  %4759 = vmatmul.mubr.msk.f32.vlgmr.msra.gmra.mrb[24].mxu0 %vm1890_vm5, %v4200_v19  ;;  %v4224_v19 = vld [vmem:[%s7146_s7 + $0x150] sm:$0xff] }
 0x440   :  { %5371 = vmatpush3.bf16.msra.mxu0 %v5288_v63  ;;  %4788 = vmatprep.mubr.msk.f32.mxu0 %vm1890_vm5, %v4214_v20  ;;  %v4211_v63 = vld [vmem:[%s7146_s7 + $0x118] sm:$0xff] }
 0x441   :  { %4786 = vmatprep.subr.mxu0 %v1887_v11  ;;  %v4225_v20 = vld [vmem:[%s7146_s7 + $0x158] sm:$0xff] }
 0x444   :  { %4787 = vmatpush3.msra.mxu0 %v1887_v11  ;;  %v4219_v11 = vld [vmem:[%s7146_s7 + $0x128] sm:$0xff] }
 0x445   :  { %4789 = vmatmul.mubr.msk.f32.vlgmr.msra.gmra.mrb[26].mxu0 %vm1890_vm5, %v4215_v21  ;;  %5388 = vmatprep.subr.bf16.mxu0 %v5611_v38  ;;  %v5372_v13 = vpack.c.bf16 %v4219_v11, %v4218_v10  ;;  %v5384_v21 = vpack.c.bf16 %v4225_v20, %v4224_v19  ;;  %v4240_v10 = vld [vmem:[%s7149_s10 + $0xb8] sm:$0xff]  ;;  %v4246_v19 = vld [vmem:[%s7149_s10 + $0xe8] sm:$0xff] }
 0x446   :  { %4816 = vmatprep.mubr.msk.f32.mxu0 %vm5612_vm7, %v5610_v8 }
 0x500   :  { %v4670_v27 = vpop.f32.mrb[18].mxu0 }
 0x501   :  { %v1963_v28 = vpop.f32.mrb[19].mxu0 }
 0x506   :  { %v4679_v17 = vpop.f32.mrb[20].mxu0 }
 0x507   :  { %v2056_v33 = vpop.f32.mrb[21].mxu0 }
 0x508   :  { %4698 = vmatprep.mubr.msk.f32.mxu1 %vm2075_vm6, %v2056_v33  ;;  %v2780_v33 = vld [vmem:[%s7148_s9] sm:$0xff] }
 0x509   :  { %4699 = vmatmul.mubr.msk.f32.vlgmr.msra.gmra.mrb[48].mxu1 %vm2075_vm6, %v4679_v17 }
 0x50a   :  { %5315 = vmatpush3.bf16.msra.mxu1 %v5312_v26  ;;  %4719 = vmatprep.mubr.msk.f32.mxu1 %vm2075_vm6, %v1963_v28 }
 0x50b   :  { %5317 = vmatprep.subr.bf16.mxu1 %v5316_v34 }
 0x50c   :  { %v4730_v41 = vpop.f32.mrb[22].mxu0 }
 0x50d   :  { %v2313_v43 = vpop.f32.mrb[23].mxu0 }
 0x50e   :  { %5319 = vmatpush3.bf16.msra.mxu1 %v5316_v34  ;;  %v2930_v34 = vld [vmem:[%s7149_s10] sm:$0xff] }
 0x50f   :  { %5321 = vmatprep.subr.bf16.mxu1 %v5320_v37 }
 0x512   :  { %5323 = vmatpush3.bf16.msra.mxu1 %v5320_v37  ;;  %v6630_v45 = vpop.f32.mrb[24].mxu0  ;;  %v5395_v37 = vpack.c.bf16 %v2931_v35, %v2930_v34  ;;  %v4250_v34 = vld [vmem:[%s7150_s11 + $0x2] sm:$0x3] }
 0x513   :  { %5325 = vmatprep.subr.bf16.mxu1 %v5324_v25  ;;  %v2490_v23 = vpop.f32.mrb[25].mxu0 }
 0x516   :  { %5327 = vmatpush3.bf16.msra.mxu1 %v5324_v25  ;;  %v2935_v25 = vld [vmem:[%s7149_s10 + $0x28] sm:$0xff] }
 0x517   :  { %4717 = vmatprep.subr.mxu1 %v1980_v29 }
 0x518   :  { %v6647_v48 = vpop.f32.mrb[26].mxu0 }
 0x519   :  { %v2667_v49 = vpop.f32.mrb[27].mxu0 }
 0x51a   :  { %4718 = vmatpush3.msra.mxu1 %v1980_v29  ;;  %v2937_v29 = vld [vmem:[%s7149_s10 + $0x38] sm:$0xff] }
 0x51b   :  { %4720 = vmatmul.mubr.msk.f32.vlgmr.msra.gmra.mrb[48].mxu1 %vm2075_vm6, %v4670_v27  ;;  %5333 = vmatprep.subr.bf16.mxu1 %v5332_v47 }
 0x51c   :  { %5335 = vmatpush3.bf16.msra.mxu1 %v5332_v47  ;;  %4749 = vmatprep.mubr.msk.f32.mxu1 %vm2075_vm6, %v2313_v43  ;;  %v2934_v43 = vld [vmem:[%s7149_s10 + $0x20] sm:$0xff]  ;;  %v2940_v47 = vld [vmem:[%s7149_s10 + $0x50] sm:$0xff] }
 0x51d   :  { %5337 = vmatprep.subr.bf16.mxu1 %v5336_v44 }
 0x520   :  { %5339 = vmatpush3.bf16.msra.mxu1 %v5336_v44 }
 0x521   :  { %5341 = vmatprep.subr.bf16.mxu1 %v5340_v53 }
 0x524   :  { %5343 = vmatpush3.bf16.msra.mxu1 %v5340_v53  ;;  %v2944_v53 = vld [vmem:[%s7149_s10 + $0x70] sm:$0xff] }
 0x525   :  { %5345 = vmatprep.subr.bf16.mxu1 %v5344_v55  ;;  %v5416_v56 = vpack.c.bf16 %v2945_v54, %v2944_v53  ;;  %v4264_v54 = vld [vmem:[%s7151_s12 + $0x80] sm:$0xff] }
 0x528   :  { %5347 = vmatpush3.bf16.msra.mxu1 %v5344_v55 }
 0x529   :  { %4747 = vmatprep.subr.mxu1 %v4196_v58 }
 0x52c   :  { %4748 = vmatpush3.msra.mxu1 %v4196_v58 }
 0x52d   :  { %5353 = vmatprep.subr.bf16.mxu1 %v5352_v0  ;;  %4750 = vmatmul.mubr.msk.f32.vlgmr.msra.gmra.mrb[48].mxu1 %vm2075_vm6, %v4730_v41  ;;  %v5398_v41 = vpack.c.bf16 %v2933_v40, %v2932_v15  ;;  %v4256_v40 = vld [vmem:[%s7151_s12 + $0x60] sm:$0xff] }
 0x52e   :  { %5355 = vmatpush3.bf16.msra.mxu1 %v5352_v0  ;;  %4779 = vmatprep.mubr.msk.f32.mxu1 %vm2075_vm6, %v2490_v23  ;;  %v2936_v23 = vld [vmem:[%s7149_s10 + $0x30] sm:$0xff] }
 0x52f   :  { %5357 = vmatprep.subr.bf16.mxu1 %v5356_v1  ;;  %v5404_v31 = vpack.c.bf16 %v2937_v29, %v2936_v23  ;;  %v3179_v29 = vld [vmem:[%s7151_s12] sm:$0xff] }
 0x532   :  { %5359 = vmatpush3.bf16.msra.mxu1 %v5356_v1  ;;  %v4235_v1 = vld [vmem:[%s7149_s10 + $0x90] sm:$0xff] }
 0x533   :  { %5361 = vmatprep.subr.bf16.mxu1 %v5360_v3 }
 0x536   :  { %5363 = vmatpush3.bf16.msra.mxu1 %v5360_v3  ;;  %v5422_v3 = vpack.c.bf16 %v4236_v2, %v4235_v1  ;;  %v4268_v1 = vld [vmem:[%s7151_s12 + $0xa0] sm:$0xff]  ;;  %v4269_v2 = vld [vmem:[%s7151_s12 + $0xa8] sm:$0xff] }
 0x537   :  { %5365 = vmatprep.subr.bf16.mxu1 %v5364_v9 }
 0x53a   :  { %5367 = vmatpush3.bf16.msra.mxu1 %v5364_v9  ;;  %v5425_v9 = vpack.c.bf16 %v4238_v6, %v4237_v5  ;;  %v4275_v5 = vld [vmem:[%s7151_s12 + $0xc0] sm:$0xff]  ;;  %v4276_v6 = vld [vmem:[%s7151_s12 + $0xc8] sm:$0xff] }
 0x53b   :  { %4777 = vmatprep.subr.mxu1 %v4211_v63 }
 0x53e   :  { %4778 = vmatpush3.msra.mxu1 %v4211_v63  ;;  %v4239_v63 = vld [vmem:[%s7149_s10 + $0xb0] sm:$0xff] }
 0x53f   :  { %5373 = vmatprep.subr.bf16.mxu1 %v5372_v13  ;;  %4780 = vmatmul.mubr.msk.f32.vlgmr.msra.gmra.mrb[48].mxu1 %vm2075_vm6, %v6630_v45  ;;  %v5401_v45 = vpack.c.bf16 %v2935_v25, %v2934_v43  ;;  %v5428_v11 = vpack.c.bf16 %v4240_v10, %v4239_v63  ;;  %v4258_v25 = vld [vmem:[%s7151_s12 + $0x70] sm:$0xff]  ;;  %v4273_v63 = vld [vmem:[%s7150_s11 + $0x6] sm:$0x3]  ;;  %v5479_v10 = vpack.c.bf16 %v4276_v6, %v4275_v5 }
 0x540   :  { %5375 = vmatpush3.bf16.msra.mxu1 %v5372_v13  ;;  %4809 = vmatprep.mubr.msk.f32.mxu1 %vm2075_vm6, %v2667_v49  ;;  %v2942_v49 = vld [vmem:[%s7149_s10 + $0x60] sm:$0xff]  ;;  %v5431_v13 = vpack.c.bf16 %v4242_v60, %v4241_v12  ;;  %v4278_v12 = vld [vmem:[%s7151_s12 + $0xd8] sm:$0xff] }
 0x541   :  { %5377 = vmatprep.subr.bf16.mxu1 %v5376_v14  ;;  %v5413_v52 = vpack.c.bf16 %v2943_v50, %v2942_v49  ;;  %v3185_v50 = vld [vmem:[%s7151_s12 + $0x30] sm:$0xff] }
 0x544   :  { %5379 = vmatpush3.bf16.msra.mxu1 %v5376_v14  ;;  %v4243_v14 = vld [vmem:[%s7149_s10 + $0xd0] sm:$0xff] }
 0x545   :  { %5381 = vmatprep.subr.bf16.mxu1 %v5380_v18  ;;  %v5434_v7 = vpack.c.bf16 %v4244_v16, %v4243_v14  ;;  %v4271_v14 = vld [vmem:[%s7151_s12 + $0xb8] sm:$0xff]  ;;  %v4279_v16 = vld [vmem:[%s7151_s12 + $0xe0] sm:$0xff] }
 0x548   :  { %5383 = vmatpush3.bf16.msra.mxu1 %v5380_v18  ;;  %v4245_v18 = vld [vmem:[%s7149_s10 + $0xe0] sm:$0xff] }
 0x549   :  { %5385 = vmatprep.subr.bf16.mxu1 %v5384_v21  ;;  %v5437_v20 = vpack.c.bf16 %v4246_v19, %v4245_v18  ;;  %v4280_v18 = vld [vmem:[%s7151_s12 + $0xe8] sm:$0xff] }
 0x54a   :  { %v5485_v19 = vpack.c.bf16 %v4280_v18, %v4279_v16  ;;  %v4285_v16 = vld [vmem:[%s7154_s15] ss:$0 sm:$0xff] }
 0x54c   :  { %5387 = vmatpush3.bf16.msra.mxu1 %v5384_v21  ;;  %v4247_v21 = vld [vmem:[%s7149_s10 + $0xf0] sm:$0xff] }
 0x54d   :  { %4807 = vmatprep.subr.mxu1 %v4226_v22 }
 0x550   :  { %4808 = vmatpush3.msra.mxu1 %v4226_v22  ;;  %v4248_v22 = vld [vmem:[%s7149_s10 + $0xf8] sm:$0xff] }
 0x551   :  { %4810 = vmatmul.mubr.msk.f32.vlgmr.msra.gmra.mrb[48].mxu1 %vm2075_vm6, %v6647_v48  ;;  %4896 = vmatprep.subr.mxu1 %v5610_v8  ;;  %v2941_v48 = vld [vmem:[%s7149_s10 + $0x58] sm:$0xff] }
 0x552   :  { %4898 = vmatprep.mubr.msk.f32.mxu1 %vm5612_vm7, %v5610_v8  ;;  %v5410_v44 = vpack.c.bf16 %v2941_v48, %v2940_v47  ;;  %v3183_v48 = vld [vmem:[%s7151_s12 + $0x20] sm:$0xff] }
 0x624   :  { %v4811_v4 = vpop.f32.mrb[48].mxu1 }
 0x625   :  { %v2777_v26 = vadd.f32 %v4811_v4, %v4229_v24  ;;  %v2758_v27 = vpop.f32.mrb[49].mxu1 }
 0x626   :  { %v2776_v28 = vadd.f32 %v4229_v24, %v2758_v27  ;;  %v5440_v24 = vpack.c.bf16 %v4248_v22, %v4247_v21  ;;  %v4282_v21 = vld [vmem:[%s7151_s12 + $0xf8] sm:$0xff] }
 0x627   :  { %v2779_v30 = vmax.f32 %v2777_v26, 0.0 }
 0x628   :  { %v2778_v32 = vmax.f32 %v2776_v28, 0.0 }
 0x62a   :  { %v5389_v17 = vpack.c.bf16 %v2779_v30, %v2778_v32  ;;  %v3104_v32 = vld [vmem:[%s7150_s11] sm:$0x3] }
 0x62c   :  { %5390 = vmatpush3.bf16.msra.mxu0 %v5389_v17 }
 0x62d   :  { %5391 = vmatprep.subr.bf16.mxu0 %v5611_v38 }
 0x62f   :  { %4817 = vmatmul.mubr.msk.f32.vlgmr.msra.gmra.mrb[28].mxu0 %vm1696_vm4, %v2780_v33  ;;  %v4253_v33 = vld [vmem:[%s7151_s12 + $0x48] sm:$0xff] }
 0x630   :  { %5393 = vmatpush3.bf16.msra.mxu0 %v5389_v17  ;;  %4823 = vmatprep.mubr.msk.f32.mxu0 %vm5612_vm7, %v5610_v8  ;;  %v4252_v17 = vld [vmem:[%s7151_s12 + $0x40] sm:$0xff] }
 0x631   :  { %5394 = vmatprep.subr.bf16.mxu0 %v5611_v38  ;;  %v5443_v35 = vpack.c.bf16 %v4253_v33, %v4252_v17  ;;  %v3745_v33 = vld [vmem:[%s7153_s14 + $0x10] sm:$0xff] }
 0x633   :  { %4824 = vmatmul.mubr.msk.f32.vlgmr.msra.gmra.mrb[30].mxu0 %vm1696_vm4, %v4231_v36  ;;  %v4254_v36 = vld [vmem:[%s7151_s12 + $0x50] sm:$0xff] }
 0x634   :  { %5396 = vmatpush3.bf16.msra.mxu0 %v5395_v37  ;;  %4858 = vmatprep.mubr.msk.f32.mxu0 %vm5612_vm7, %v5610_v8  ;;  %v4255_v37 = vld [vmem:[%s7151_s12 + $0x58] sm:$0xff] }
 0x635   :  { %5397 = vmatprep.subr.bf16.mxu0 %v5611_v38  ;;  %v5446_v15 = vpack.c.bf16 %v4255_v37, %v4254_v36 }
 0x638   :  { %5399 = vmatpush3.bf16.msra.mxu0 %v5398_v41  ;;  %v4257_v41 = vld [vmem:[%s7151_s12 + $0x68] sm:$0xff] }
 0x639   :  { %5400 = vmatprep.subr.bf16.mxu0 %v5611_v38  ;;  %v5449_v43 = vpack.c.bf16 %v4257_v41, %v4256_v40  ;;  %v3748_v40 = vld [vmem:[%s7153_s14 + $0x28] sm:$0xff] }
 0x63c   :  { %5402 = vmatpush3.bf16.msra.mxu0 %v5401_v45  ;;  %v4259_v45 = vld [vmem:[%s7151_s12 + $0x78] sm:$0xff] }
 0x63d   :  { %5403 = vmatprep.subr.bf16.mxu0 %v5611_v38  ;;  %v5452_v23 = vpack.c.bf16 %v4259_v45, %v4258_v25  ;;  %v3749_v45 = vld [vmem:[%s7153_s14 + $0x30] sm:$0xff] }
 0x640   :  { %5405 = vmatpush3.bf16.msra.mxu0 %v5404_v31  ;;  %v3180_v31 = vld [vmem:[%s7151_s12 + $0x8] sm:$0xff] }
 0x641   :  { %5406 = vmatprep.subr.bf16.mxu0 %v5611_v38  ;;  %v5455_v39 = vpack.c.bf16 %v3180_v31, %v3179_v29  ;;  %v3751_v31 = vld [vmem:[%s7153_s14 + $0x40] sm:$0xff] }
 0x644   :  { %5408 = vmatpush3.bf16.msra.mxu0 %v5407_v46  ;;  %v3182_v46 = vld [vmem:[%s7151_s12 + $0x18] sm:$0xff] }
 0x645   :  { %5409 = vmatprep.subr.bf16.mxu0 %v5611_v38  ;;  %v5458_v47 = vpack.c.bf16 %v3182_v46, %v3181_v42  ;;  %v3753_v46 = vld [vmem:[%s7153_s14 + $0x50] sm:$0xff] }
 0x648   :  { %5411 = vmatpush3.bf16.msra.mxu0 %v5410_v44  ;;  %v3184_v44 = vld [vmem:[%s7151_s12 + $0x28] sm:$0xff] }
 0x649   :  { %5412 = vmatprep.subr.bf16.mxu0 %v5611_v38  ;;  %v5461_v49 = vpack.c.bf16 %v3184_v44, %v3183_v48  ;;  %v3755_v44 = vld [vmem:[%s7153_s14 + $0x60] sm:$0xff] }
 0x64c   :  { %5414 = vmatpush3.bf16.msra.mxu0 %v5413_v52  ;;  %v3186_v52 = vld [vmem:[%s7151_s12 + $0x38] sm:$0xff] }
 0x64d   :  { %5415 = vmatprep.subr.bf16.mxu0 %v5611_v38  ;;  %v5464_v53 = vpack.c.bf16 %v3186_v52, %v3185_v50  ;;  %v3757_v52 = vld [vmem:[%s7153_s14 + $0x70] sm:$0xff] }
 0x650   :  { %5417 = vmatpush3.bf16.msra.mxu0 %v5416_v56  ;;  %v4265_v56 = vld [vmem:[%s7151_s12 + $0x88] sm:$0xff] }
 0x651   :  { %5418 = vmatprep.subr.bf16.mxu0 %v5611_v38 }
 0x702   :  { %v2850_v55 = vpop.f32.mrb[28].mxu0 }
 0x703   :  { %v4818_v58 = vpop.f32.mrb[29].mxu0 }
 0x706   :  { %v2925_v61 = vpop.f32.mrb[30].mxu0 }
 0x707   :  { %v2929_v0 = vmax.f32 %v2850_v55, %v2925_v61  ;;  %v4825_v51 = vpop.f32.mrb[31].mxu0  ;;  %v5467_v55 = vpack.c.bf16 %v4265_v56, %v4264_v54  ;;  %v3841_v54 = vld [vmem:[%s7155_s16 + $0x8] sm:$0xff]  ;;  %v3842_v56 = vld [vmem:[%s7155_s16 + $0x10] sm:$0xff] }
 0x709   :  { %4859 = vmatmul.mubr.f32.vlgmr.msra.gmra.mrb[32].mxu0 %v2929_v0 }
 0x70a   :  { %5420 = vmatpush3.bf16.msra.mxu0 %v5419_v62  ;;  %4893 = vmatprep.mubr.msk.f32.mxu0 %vm5612_vm7, %v5610_v8  ;;  %v5470_v62 = vpack.c.bf16 %v4267_v59, %v4266_v57  ;;  %v3844_v59 = vld [vmem:[%s7155_s16 + $0x20] sm:$0xff] }
 0x70b   :  { %5421 = vmatprep.subr.bf16.mxu0 %v5611_v38 }
 0x70e   :  { %5423 = vmatpush3.bf16.msra.mxu0 %v5422_v3  ;;  %v4262_v3 = vld [vmem:[%s7150_s11 + $0x4] sm:$0x3] }
 0x70f   :  { %5424 = vmatprep.subr.bf16.mxu0 %v5611_v38 }
 0x712   :  { %5426 = vmatpush3.bf16.msra.mxu0 %v5425_v9  ;;  %v5473_v9 = vpack.c.bf16 %v4269_v2, %v4268_v1  ;;  %v3847_v1 = vld [vmem:[%s7155_s16 + $0x38] sm:$0xff] }
 0x713   :  { %5427 = vmatprep.subr.bf16.mxu0 %v5611_v38 }
 0x716   :  { %5429 = vmatpush3.bf16.msra.mxu0 %v5428_v11  ;;  %v4277_v11 = vld [vmem:[%s7151_s12 + $0xd0] sm:$0xff] }
 0x717   :  { %5430 = vmatprep.subr.bf16.mxu0 %v5611_v38  ;;  %v5482_v60 = vpack.c.bf16 %v4278_v12, %v4277_v11 }
 0x71a   :  { %5432 = vmatpush3.bf16.msra.mxu0 %v5431_v13  ;;  %v4270_v13 = vld [vmem:[%s7151_s12 + $0xb0] sm:$0xff] }
 0x71b   :  { %5433 = vmatprep.subr.bf16.mxu0 %v5611_v38 }
 0x71e   :  { %5435 = vmatpush3.bf16.msra.mxu0 %v5434_v7  ;;  %v5476_v7 = vpack.c.bf16 %v4271_v14, %v4270_v13  ;;  %v3850_v14 = vld [vmem:[%s7155_s16 + $0x50] sm:$0xf] }
 0x71f   :  { %5436 = vmatprep.subr.bf16.mxu0 %v5611_v38 }
 0x722   :  { %5438 = vmatpush3.bf16.msra.mxu0 %v5437_v20  ;;  %v4281_v20 = vld [vmem:[%s7151_s12 + $0xf0] sm:$0xff] }
 0x723   :  { %5439 = vmatprep.subr.bf16.mxu0 %v5611_v38  ;;  %v5488_v22 = vpack.c.bf16 %v4282_v21, %v4281_v20 }
 0x726   :  { %5441 = vmatpush3.bf16.msra.mxu0 %v5440_v24 }
 0x727   :  { %5454 = vmatprep.subr.bf16.mxu0 %v5611_v38 }
 0x729   :  { %4894 = vmatmul.mubr.f32.vlgmr.msra.gmra.mrb[34].mxu0 %v2929_v0 }
 0x72a   :  { %4941 = vmatprep.mubr.msk.f32.mxu0 %vm5612_vm7, %v5610_v8  ;;  %5456 = vmatpush3.bf16.msra.mxu0 %v5455_v39  ;;  %v3752_v39 = vld [vmem:[%s7153_s14 + $0x48] sm:$0xff] }
 0x72b   :  { %5457 = vmatprep.subr.bf16.mxu0 %v5611_v38  ;;  %v5503_v42 = vpack.c.bf16 %v3752_v39, %v3751_v31 }
 0x72e   :  { %5459 = vmatpush3.bf16.msra.mxu0 %v5458_v47  ;;  %v3754_v47 = vld [vmem:[%s7153_s14 + $0x58] sm:$0xff] }
 0x72f   :  { %5460 = vmatprep.subr.bf16.mxu0 %v5611_v38  ;;  %v5506_v48 = vpack.c.bf16 %v3754_v47, %v3753_v46 }
 0x732   :  { %5462 = vmatpush3.bf16.msra.mxu0 %v5461_v49  ;;  %v3756_v49 = vld [vmem:[%s7153_s14 + $0x68] sm:$0xff] }
 0x733   :  { %5463 = vmatprep.subr.bf16.mxu0 %v5611_v38  ;;  %v5509_v50 = vpack.c.bf16 %v3756_v49, %v3755_v44 }
 0x736   :  { %5465 = vmatpush3.bf16.msra.mxu0 %v5464_v53  ;;  %v3840_v53 = vld [vmem:[%s7155_s16] sm:$0xff] }
 0x737   :  { %5466 = vmatprep.subr.bf16.mxu0 %v5611_v38 }
 0x7dc   :  { %v3012_v4 = vpop.f32.mrb[32].mxu0 }
 0x7dd   :  { %v4860_v26 = vpop.f32.mrb[33].mxu0 }
 0x7de   :  { %v3743_v26 = vld [vmem:[%s7153_s14] sm:$0xff] }
 0x7fc   :  { %v3099_v27 = vpop.f32.mrb[34].mxu0 }
 0x7fd   :  { %v6865_v28 = vmax.f32 %v3012_v4, %v3099_v27  ;;  %v4895_v30 = vpop.f32.mrb[35].mxu0  ;;  %v3744_v27 = vld [vmem:[%s7153_s14 + $0x8] sm:$0xff] }
 0x7fe   :  { %v5491_v17 = vpack.c.bf16 %v3744_v27, %v3743_v26 }
 0x7ff   :  { %4897 = vmatpush3.msra.mxu1 %v6865_v28 }
 0x800   :  { %4899 = vmatmul.mubr.msk.f32.vlgmr.msra.gmra.mrb[50].mxu1 %vm3105_vm8, %v3104_v32  ;;  %4901 = vmatprep.subr.mxu1 %v5610_v8 }
 0x801   :  { %4902 = vmatpush3.msra.mxu1 %v6865_v28  ;;  %4903 = vmatprep.mubr.msk.f32.mxu1 %vm5612_vm7, %v5610_v8 }
 0x802   :  { %5442 = vmatprep.subr.bf16.mxu1 %v5611_v38 }
 0x804   :  { %4904 = vmatmul.mubr.msk.f32.vlgmr.msra.gmra.mrb[52].mxu1 %vm3105_vm8, %v4250_v34  ;;  %v3746_v34 = vld [vmem:[%s7153_s14 + $0x18] sm:$0xff] }
 0x805   :  { %5444 = vmatpush3.bf16.msra.mxu1 %v5443_v35  ;;  %4922 = vmatprep.mubr.msk.f32.mxu1 %vm5612_vm7, %v5610_v8  ;;  %v5494_v37 = vpack.c.bf16 %v3746_v34, %v3745_v33 }
 0x806   :  { %5445 = vmatprep.subr.bf16.mxu1 %v5611_v38 }
 0x809   :  { %5447 = vmatpush3.bf16.msra.mxu1 %v5446_v15  ;;  %v3747_v15 = vld [vmem:[%s7153_s14 + $0x20] sm:$0xff] }
 0x80a   :  { %5448 = vmatprep.subr.bf16.mxu1 %v5611_v38  ;;  %v5497_v25 = vpack.c.bf16 %v3748_v40, %v3747_v15 }
 0x80d   :  { %5450 = vmatpush3.bf16.msra.mxu1 %v5449_v43 }
 0x80e   :  { %5451 = vmatprep.subr.bf16.mxu1 %v5611_v38 }
 0x811   :  { %5453 = vmatpush3.bf16.msra.mxu1 %v5452_v23  ;;  %v3750_v23 = vld [vmem:[%s7153_s14 + $0x38] sm:$0xff] }
 0x812   :  { %4944 = vmatprep.subr.mxu1 %v5610_v8  ;;  %v5500_v29 = vpack.c.bf16 %v3750_v23, %v3749_v45 }
 0x8d3   :  { %v3175_v58 = vpop.f32.mrb[50].mxu1 }
 0x8d4   :  { %v4900_v61 = vpop.f32.mrb[51].mxu1  ;;  %4942 = vmatmul.mubr.msk.f32.vlgmr.msra.gmra.mrb[36].mxu0 %vm3271_vm9, %v3175_v58  ;;  %v3843_v58 = vld [vmem:[%s7155_s16 + $0x18] sm:$0xff] }
 0x8d5   :  { %5468 = vmatpush3.bf16.msra.mxu0 %v5467_v55  ;;  %4965 = vmatprep.mubr.msk.f32.mxu0 %vm5612_vm7, %v5610_v8  ;;  %v5512_v55 = vpack.c.bf16 %v3841_v54, %v3840_v53  ;;  %v5515_v57 = vpack.c.bf16 %v3843_v58, %v3842_v56  ;;  %v3845_v61 = vld [vmem:[%s7155_s16 + $0x28] sm:$0xff] }
 0x8d6   :  { %5469 = vmatprep.subr.bf16.mxu0 %v5611_v38 }
 0x8d7   :  { %v3258_v0 = vpop.f32.mrb[52].mxu1 }
 0x8d8   :  { %4923 = vmatmul.mubr.msk.f32.vlgmr.msra.gmra.mrb[54].mxu1 %vm3271_vm9, %v3258_v0  ;;  %v4905_v51 = vpop.f32.mrb[53].mxu1  ;;  %v3846_v0 = vld [vmem:[%s7155_s16 + $0x30] sm:$0xff] }
 0x8d9   :  { %4945 = vmatpush3.msra.mxu1 %v6865_v28  ;;  %4946 = vmatprep.mubr.msk.f32.mxu1 %vm5612_vm7, %v5610_v8  ;;  %v5521_v2 = vpack.c.bf16 %v3847_v1, %v3846_v0 }
 0x8da   :  { %4968 = vmatprep.subr.mxu1 %v5610_v8  ;;  %5471 = vmatpush3.bf16.msra.mxu0 %v5470_v62  ;;  %v5518_v62 = vpack.c.bf16 %v3845_v61, %v3844_v59 }
 0x8db   :  { %5472 = vmatprep.subr.bf16.mxu0 %v5611_v38 }
 0x8dc   :  { %4947 = vmatmul.mubr.msk.f32.vlgmr.msra.gmra.mrb[56].mxu1 %vm3105_vm8, %v4262_v3 }
 0x8dd   :  { %4969 = vmatpush3.msra.mxu1 %v6865_v28  ;;  %4970 = vmatprep.mubr.msk.f32.mxu1 %vm5612_vm7, %v5610_v8 }
 0x8de   :  { %5478 = vmatprep.subr.bf16.mxu1 %v5611_v38  ;;  %5474 = vmatpush3.bf16.msra.mxu0 %v5473_v9  ;;  %v4284_v9 = vld [vmem:[%s7152_s13] ss:$0 sm:$0xff] }
 0x8df   :  { %5475 = vmatprep.subr.bf16.mxu0 %v5611_v38 }
 0x8e0   :  { %4971 = vmatmul.mubr.msk.f32.vlgmr.msra.gmra.mrb[58].mxu1 %vm3105_vm8, %v4273_v63 }
 0x8e1   :  { %5480 = vmatpush3.bf16.msra.mxu1 %v5479_v10  ;;  %4989 = vmatprep.mubr.msk.f32.mxu1 %vm5612_vm7, %v5610_v8 }
 0x8e2   :  { %5481 = vmatprep.subr.bf16.mxu1 %v5611_v38  ;;  %5477 = vmatpush3.bf16.msra.mxu0 %v5476_v7 }
 0x8e3   :  { %5490 = vmatprep.subr.bf16.mxu0 %v5611_v38 }
 0x8e5   :  { %5483 = vmatpush3.bf16.msra.mxu1 %v5482_v60  ;;  %v3848_v60 = vld [vmem:[%s7155_s16 + $0x40] sm:$0xff] }
 0x8e6   :  { %5484 = vmatprep.subr.bf16.mxu1 %v5611_v38 }
 0x8e9   :  { %5486 = vmatpush3.bf16.msra.mxu1 %v5485_v19 }
 0x8ea   :  { %5487 = vmatprep.subr.bf16.mxu1 %v5611_v38 }
 0x8ed   :  { %5489 = vmatpush3.bf16.msra.mxu1 %v5488_v22 }
 0x8ee   :  { %5511 = vmatprep.subr.bf16.mxu1 %v5611_v38 }
 0x9a7   :  { %v3414_v24 = vpop.f32.mrb[36].mxu0 }
 0x9a8   :  { %v4943_v4 = vpop.f32.mrb[37].mxu0 }
 0x9ab   :  { %v3341_v28 = vpop.f32.mrb[54].mxu1 }
 0x9ac   :  { %v4924_v30 = vpop.f32.mrb[55].mxu1  ;;  %v7023_v32 = vadd.f32 %v3414_v24, %v3341_v28 }
 0x9af   :  { %v3489_v35 = vpop.f32.mrb[56].mxu1 }
 0x9b0   :  { %4966 = vmatmul.mubr.msk.f32.vlgmr.msra.gmra.mrb[38].mxu0 %vm3271_vm9, %v3489_v35  ;;  %v4948_v36 = vpop.f32.mrb[57].mxu1 }
 0x9b1   :  { %5492 = vmatpush3.bf16.msra.mxu0 %v5491_v17  ;;  %5022 = vmatprep.mubr.msk.f32.mxu0 %vm5612_vm7, %v5610_v8 }
 0x9b2   :  { %5493 = vmatprep.subr.bf16.mxu0 %v5611_v38 }
 0x9b3   :  { %v3647_v41 = vpop.f32.mrb[58].mxu1 }
 0x9b4   :  { %4990 = vmatmul.mubr.msk.f32.vlgmr.msra.gmra.mrb[60].mxu1 %vm3271_vm9, %v3647_v41  ;;  %v4972_v43 = vpop.f32.mrb[59].mxu1 }
 0x9b5   :  { %5495 = vmatpush3.bf16.msra.mxu0 %v5494_v37  ;;  %5047 = vmatprep.mubr.msk.f32.mxu1 %vm5612_vm7, %v5610_v8 }
 0x9b6   :  { %5496 = vmatprep.subr.bf16.mxu0 %v5611_v38  ;;  %5513 = vmatpush3.bf16.msra.mxu1 %v5512_v55 }
 0x9b7   :  { %5514 = vmatprep.subr.bf16.mxu1 %v5611_v38 }
 0x9b9   :  { %5498 = vmatpush3.bf16.msra.mxu0 %v5497_v25 }
 0x9ba   :  { %5499 = vmatprep.subr.bf16.mxu0 %v5611_v38  ;;  %5516 = vmatpush3.bf16.msra.mxu1 %v5515_v57 }
 0x9bb   :  { %5517 = vmatprep.subr.bf16.mxu1 %v5611_v38 }
 0x9bd   :  { %5501 = vmatpush3.bf16.msra.mxu0 %v5500_v29 }
 0x9be   :  { %5502 = vmatprep.subr.bf16.mxu0 %v5611_v38  ;;  %5519 = vmatpush3.bf16.msra.mxu1 %v5518_v62 }
 0x9bf   :  { %5520 = vmatprep.subr.bf16.mxu1 %v5611_v38 }
 0x9c1   :  { %5504 = vmatpush3.bf16.msra.mxu0 %v5503_v42 }
 0x9c2   :  { %5505 = vmatprep.subr.bf16.mxu0 %v5611_v38  ;;  %5522 = vmatpush3.bf16.msra.mxu1 %v5521_v2 }
 0x9c3   :  { %5523 = vmatprep.subr.bf16.mxu1 %v5611_v38 }
 0x9c5   :  { %5507 = vmatpush3.bf16.msra.mxu0 %v5506_v48 }
 0x9c6   :  { %5508 = vmatprep.subr.bf16.mxu0 %v5611_v38  ;;  %v3849_v38 = vld [vmem:[%s7155_s16 + $0x48] sm:$0xff]  ;;  %s5586_s16 = scalar_lea.vmem %s3943_s26, 32 }
 0x9c7   :  { %v5524_v13 = vpack.c.bf16 %v3849_v38, %v3848_v60  ;;  %p5587_p0 = scmp.ne.s32.totalorder %s3943_s26, %s5586_s16  ;;  %p5592_p2 = scmp.lt.s32.totalorder %s5586_s16, %s5586_s16 }
 0x9c9   :  { %5510 = vmatpush3.bf16.msra.mxu0 %v5509_v50  ;;  %5525 = vmatpush3.bf16.msra.mxu1 %v5524_v13  ;;  %p5593_p3 = por %p5592_p2, %p5591_p1 }
 0x9ca   :  { %5020 = vmatprep.subr.mxu0 %v5610_v8  ;;  %5045 = vmatprep.subr.mxu1 %v5610_v8  ;;  %v4287_v8 = vld [vmem:[%s7156_s17] ss:$0 sm:$0xff] }
 0x9cb   :  { %p5594_p4 = pnand %p5593_p3, %p5587_p0 }
 0x9cd   :  { %5021 = vmatpush3.msra.mxu0 %v3757_v52  ;;  %5046 = vmatpush3.msk.msra.mxu1 %vm371_vm1, %v3850_v14 }
 0xa83   :  { %v3571_v51 = vpop.f32.mrb[38].mxu0 }
 0xa84   :  { %v3575_v3 = vadd.f32 %v3571_v51, %v7023_v32  ;;  %v4967_v5 = vpop.f32.mrb[39].mxu0 }
 0xa87   :  { %v3729_v6 = vpop.f32.mrb[60].mxu1 }
 0xa88   :  { %v3733_v63 = vadd.f32 %v3729_v6, %v3575_v3  ;;  %v4991_v10 = vpop.f32.mrb[61].mxu1 }
 0xa8a   :  { %v3741_v11 = vadd.f32 %v4284_v9, %v3733_v63 }
 0xa8c   :  { %v3742_v12 = vmax.f32 %v3741_v11, 0.0 }
 0xa8e   :  { %5023 = vmatmul.mubr.msk.f32.vlgmr.msra.gmra.mrb[40].mxu0 %vm3765_vm10, %v3742_v12 }
 0xb61   :  { %v3835_v7 = vpop.f32.mrb[40].mxu0 }
 0xb62   :  { %v3836_v18 = vadd.f32 %v4285_v16, %v3835_v7  ;;  %v5024_v19 = vpop.f32.mrb[41].mxu0 }
 0xb64   :  { %v3839_v20 = vmax.f32 %v3836_v18, 0.0 }
 0xb66   :  { %5048 = vmatmul.mubr.msk.f32.vlgmr.msra.gmra.mrb[62].mxu1 %vm352_vm2, %v3839_v20 }
 0xc39   :  { %v3930_v21 = vpop.f32.mrb[62].mxu1 }
 0xc3a   :  { %v3931_v22 = vadd.f32 %v4287_v8, %v3930_v21  ;;  %v5049_v24 = vpop.f32.mrb[63].mxu1 }
 0xc3c   :  { %3935 = vst.msk [vmem:[#allocation2] sm:$0x3] %vm3934_vm11, %v3931_v22 }
 0xc3d   :  { %5597 = shalt.err (!%p5594_p4)
}
 0xc3e   :  { %s5598_s27 = scalar_lea.hbm %s7157_s18, 32 }
 0xc3f   :  { %p5599_p5 = scmp.ne.s32.totalorder %s7157_s18, %s5598_s27  ;;  %p5602_p6 = scmp.lt.u32.totalorder %s5598_s27, %s7157_s18 }
 0xc41   :  { %p5604_p7 = pnand %p5602_p6, %p5599_p5 }
 0xc43   :  { %5607 = shalt.err (!%p5604_p7)
}
 0xc44   :  { %3945 = dma.vmem_to_hbm [thread:$0]  %s3943_s26, 32, %s7157_s18, [#allocation3]  }
 0xc45   :  { %5608 = dma.done.wait [#allocation3], 32  }
 0xc46   :  { %5609 = vsyncadd [#allocation3], 4294967264 }
 0xc47   :  { %3949 = vsyncpa [#allocation3], 1 }

</bundles_post_ra>
